<compile_context>
chip_gen: v7x
topology: tpu7x:2x2x1
jax: 0.10.0
libtpu: 0.0.40
codegen_flags: <defaults>
</compile_context>

<pallas_src>
import functools

import jax
import jax.numpy as jnp
from jax.experimental import pallas as pl
from jax.experimental.pallas import tpu as pltpu

EPS = 1e-5


# ---------------------------------------------------------------------------
# Fused kernel
# ---------------------------------------------------------------------------
def _bottleneck_fused_kernel(x_ref, w1_ref, s1_ref, b1_ref,
                             w2_ref, s2_ref, b2_ref,
                             w3_ref, s3_ref, b3_ref,
                             o_ref, y1p_ref,
                             *, H, W, planes, TH):
    """One (batch element, row block) step of the fused BottleNeck forward.

    x_ref  : (H*W, Cin)  bf16  full image of this batch element (resident).
    w*_ref : bf16 weights; s*/b*: f32 folded-BN scale/bias (all resident).
    o_ref  : (TH*W, Cexp) bf16 output rows of this row block.
    y1p_ref: (TH+2, W+2, planes) bf16 scratch -- halo-padded conv1 output,
             fully (re)written every step (no cross-step dependence).
    """
    del H  # (full image height only needed by the wrapper)
    i = pl.program_id(1)
    n_i = pl.num_programs(1)
    start = pl.multiple_of(i * (TH * W), TH * W)

    def conv1_bn_relu(x_bf16):
        y = jnp.dot(x_bf16, w1_ref[...], preferred_element_type=jnp.float32)
        return jnp.maximum(y * s1_ref[...] + b1_ref[...], 0.0)

    # ---- stage 1: 1x1 conv + bn1 + relu into the halo-padded bf16 scratch ----
    # Zero only the pad borders (left/right columns every step; top/bottom rows
    # only at the image boundary) -- the interior is always overwritten.
    zero_col = jnp.zeros((TH + 2, 1, planes), dtype=y1p_ref.dtype)
    y1p_ref[:, 0:1, :] = zero_col
    y1p_ref[:, W + 1:W + 2, :] = zero_col

    xb = x_ref[pl.ds(start, TH * W), :]                     # bf16 (TH*W, Cin)
    y1 = conv1_bn_relu(xb)
    y1p_ref[1:TH + 1, 1:W + 1, :] = (
        y1.reshape(TH, W, planes).astype(y1p_ref.dtype))

    @pl.when(i == 0)
    def _():                                                # top image border
        y1p_ref[0:1, :, :] = jnp.zeros((1, W + 2, planes), dtype=y1p_ref.dtype)

    @pl.when(i > 0)
    def _():                                                # top halo row
        xt = x_ref[pl.ds(start - W, W), :]
        yt = conv1_bn_relu(xt)
        y1p_ref[0:1, 1:W + 1, :] = yt.reshape(1, W, planes).astype(y1p_ref.dtype)

    @pl.when(i == n_i - 1)
    def _():                                                # bottom image border
        y1p_ref[TH + 1:TH + 2, :, :] = jnp.zeros((1, W + 2, planes),
                                                 dtype=y1p_ref.dtype)

    @pl.when(i < n_i - 1)
    def _():                                                # bottom halo row
        xb2 = x_ref[pl.ds(start + TH * W, W), :]
        yb = conv1_bn_relu(xb2)
        y1p_ref[TH + 1:TH + 2, 1:W + 1, :] = (
            yb.reshape(1, W, planes).astype(y1p_ref.dtype))

    # ---- stage 2: 3x3 conv (pad=1) as 9 accumulating MXU dots + bn2 + relu ---
    y2 = jnp.zeros((TH * W, planes), jnp.float32)
    for kh in range(3):
        for kw in range(3):
            a = y1p_ref[kh:kh + TH, kw:kw + W, :].reshape(TH * W, planes)
            y2 = y2 + jnp.dot(a, w2_ref[kh * 3 + kw],
                              preferred_element_type=jnp.float32)
    y2 = jnp.maximum(y2 * s2_ref[...] + b2_ref[...], 0.0)

    # ---- stage 3: 1x1 conv + bn3 + residual add + relu (f32 epilogue) --------
    y3 = jnp.dot(y2.astype(jnp.bfloat16), w3_ref[...],
                 preferred_element_type=jnp.float32)
    y3 = y3 * s3_ref[...] + b3_ref[...] + xb.astype(jnp.float32)
    o_ref[...] = jnp.maximum(y3, 0.0).astype(o_ref.dtype)


# ---------------------------------------------------------------------------
# Wrapper
# ---------------------------------------------------------------------------
def _bn_fold(gamma, beta, mean, var, eps=EPS):
    scale = gamma / jnp.sqrt(var + eps)
    bias = beta - mean * scale
    return (scale.reshape(1, -1).astype(jnp.float32),
            bias.reshape(1, -1).astype(jnp.float32))


def _pick_row_block(H, W, row_block=None):
    if row_block is not None and H % row_block == 0:
        return row_block
    # aim for >= ~512 output rows per grid step to amortize per-step overhead
    for d in range(1, H + 1):
        if H % d == 0 and d * W >= 512:
            return d
    return H


def _default_vmem_limit():
    try:
        cap = getattr(pltpu.get_tpu_info(), "vmem_capacity_bytes",
                      64 * 1024 * 1024)
        # leave headroom under the physical capacity (smaller cap on v7x)
        return int(min(96 * 1024 * 1024, (cap * 3) // 4))
    except Exception:
        return 32 * 1024 * 1024


def bottleneck_forward_nhwc(x_nhwc, p, *, row_block=None, vmem_limit_bytes=None):
    """BottleNeck forward (stride=1, downsample=None). NHWC in, NHWC bf16 out."""
    N, H, W, Cin = x_nhwc.shape
    planes = p["w1"].shape[0]
    Cexp = planes * 4
    assert Cin == Cexp, "identity shortcut requires inplanes == planes * expansion"

    TH = _pick_row_block(H, W, row_block)
    nI = H // TH
    assert (TH * W) % 16 == 0 and (H * W) % 16 == 0, \
        "row tile must be 16-aligned for bf16 sublane packing"

    # NHWC -> (N*H*W, C): a pure reshape (no transpose, no extra HBM traffic).
    x2d = x_nhwc.reshape(N * H * W, Cin).astype(jnp.bfloat16)

    # Weights in bf16 for the MXU; w2 packed per-tap as (9, planes_in, planes_out).
    w1 = jnp.transpose(p["w1"][:, :, 0, 0], (1, 0)).astype(jnp.bfloat16)
    w2 = (jnp.transpose(p["w2"], (2, 3, 1, 0))
          .reshape(9, planes, planes).astype(jnp.bfloat16))
    w3 = jnp.transpose(p["w3"][:, :, 0, 0], (1, 0)).astype(jnp.bfloat16)
    s1, b1 = _bn_fold(p["g1"], p["b1"], p["m1"], p["v1"])
    s2, b2 = _bn_fold(p["g2"], p["b2"], p["m2"], p["v2"])
    s3, b3 = _bn_fold(p["g3"], p["b3"], p["m3"], p["v3"])

    kernel = functools.partial(_bottleneck_fused_kernel,
                               H=H, W=W, planes=planes, TH=TH)

    flops = 2 * N * H * W * (Cin * planes + 9 * planes * planes + planes * Cexp)
    bytes_accessed = (2 * N * H * W * (Cin + Cexp)          # bf16 activations
                      + 2 * (w1.size + w2.size + w3.size)   # bf16 weights
                      + 4 * 2 * (2 * planes + Cexp))        # f32 BN scale/bias

    res = lambda n, i: (0, 0)       # resident (constant-index) 2-D blocks
    res3 = lambda n, i: (0, 0, 0)   # resident 3-D block (w2)

    out2d = pl.pallas_call(
        kernel,
        out_shape=jax.ShapeDtypeStruct((N * H * W, Cexp), jnp.bfloat16),
        grid=(N, nI),
        in_specs=[
            pl.BlockSpec((H * W, Cin), lambda n, i: (n, 0)),     # x (per image)
            pl.BlockSpec((Cin, planes), res),                    # w1
            pl.BlockSpec((1, planes), res),                      # bn1 scale
            pl.BlockSpec((1, planes), res),                      # bn1 bias
            pl.BlockSpec((9, planes, planes), res3),             # w2 (per tap)
            pl.BlockSpec((1, planes), res),                      # bn2 scale
            pl.BlockSpec((1, planes), res),                      # bn2 bias
            pl.BlockSpec((planes, Cexp), res),                   # w3
            pl.BlockSpec((1, Cexp), res),                        # bn3 scale
            pl.BlockSpec((1, Cexp), res),                        # bn3 bias
        ],
        out_specs=pl.BlockSpec((TH * W, Cexp), lambda n, i: (n * nI + i, 0)),
        scratch_shapes=[
            pltpu.VMEM((TH + 2, W + 2, planes), jnp.bfloat16),   # halo y1 tile
        ],
        compiler_params=pltpu.CompilerParams(
            dimension_semantics=("parallel", "parallel"),
            vmem_limit_bytes=(vmem_limit_bytes or _default_vmem_limit())),
        cost_estimate=pl.CostEstimate(flops=flops, transcendentals=0,
                                      bytes_accessed=bytes_accessed),
    )(x2d, w1, s1, b1, w2, s2, b2, w3, s3, b3)

    return out2d.reshape(N, H, W, Cexp)


def bottleneck_forward(x_nchw, p, **kw):
    """PyTorch-layout (NCHW) compatibility shim.

    Adds two boundary transposes (full HBM round trips); prefer keeping the
    surrounding model NHWC and calling bottleneck_forward_nhwc directly.
    """
    out = bottleneck_forward_nhwc(jnp.transpose(x_nchw, (0, 2, 3, 1)), p, **kw)
    return jnp.transpose(out, (0, 3, 1, 2))


# ---------------------------------------------------------------------------
# Deterministic parameter init + pure-JAX reference (NHWC)
# ---------------------------------------------------------------------------
def init_params(key, inplanes, planes, expansion=4):
    ks = jax.random.split(key, 15)

    def bn_params(k1, k2, k3, k4, c):
        return (jax.random.uniform(k1, (c,), minval=0.5, maxval=1.5),
                jax.random.normal(k2, (c,)) * 0.1,
                jax.random.normal(k3, (c,)) * 0.1,
                jax.random.uniform(k4, (c,), minval=0.5, maxval=1.5))

    p = {}
    p["w1"] = jax.random.normal(ks[0], (planes, inplanes, 1, 1), jnp.float32) * 0.2
    p["w2"] = jax.random.normal(ks[1], (planes, planes, 3, 3), jnp.float32) * 0.2
    p["w3"] = jax.random.normal(ks[2], (planes * expansion, planes, 1, 1), jnp.float32) * 0.2
    p["g1"], p["b1"], p["m1"], p["v1"] = bn_params(ks[3], ks[4], ks[5], ks[6], planes)
    p["g2"], p["b2"], p["m2"], p["v2"] = bn_params(ks[7], ks[8], ks[9], ks[10], planes)
    p["g3"], p["b3"], p["m3"], p["v3"] = bn_params(ks[11], ks[12], ks[13], ks[14], planes * expansion)
    return p


def reference_forward_nhwc(x, p):
    def conv(x, w_oihw, stride, pad):
        w_hwio = jnp.transpose(w_oihw, (2, 3, 1, 0))
        return jax.lax.conv_general_dilated(
            x, w_hwio, window_strides=(stride, stride),
            padding=[(pad, pad), (pad, pad)],
            dimension_numbers=("NHWC", "HWIO", "NHWC"))

    def bn(x, g, b, m, v):
        return (x - m) / jnp.sqrt(v + EPS) * g + b

    out = jax.nn.relu(bn(conv(x, p["w1"], 1, 0), p["g1"], p["b1"], p["m1"], p["v1"]))
    out = jax.nn.relu(bn(conv(out, p["w2"], 1, 1), p["g2"], p["b2"], p["m2"], p["v2"]))
    out = bn(conv(out, p["w3"], 1, 0), p["g3"], p["b3"], p["m3"], p["v3"])
    return jax.nn.relu(out + x)


if __name__ == "__main__":
    inplanes, planes = 16, 4          # expansion = 4  ->  output channels = 16
    N, H, W = 2, 16, 16

    key = jax.random.PRNGKey(0)
    kx, kp = jax.random.split(key)
    x = jax.random.normal(kx, (N, H, W, inplanes), dtype=jnp.float32)   # NHWC
    params = init_params(kp, inplanes, planes)

    # row_block=8 -> 2 row blocks per image: exercises the halo / border paths.
    out = bottleneck_forward_nhwc(x, params, row_block=8)
    out = jax.block_until_ready(out)

    assert out.shape == (N, H, W, planes * 4)
    ref = reference_forward_nhwc(x, params)
    # Tolerance accounts for bf16 activations/IO and bf16 matmul operands
    # (accumulation, BN epilogue and residual add are f32 in-kernel).
    assert bool(jnp.allclose(out.astype(jnp.float32), ref,
                             atol=1e-1, rtol=5e-2)), "mismatch vs reference"

    print("KERNEL_OK")
</pallas_src>

<mosaic_0001>
module attributes {stable_mosaic.version = 11 : i64} {
  func.func @_bottleneck_fused_kernel(%arg0: i32, %arg1: i32, %arg2: memref<256x16xbf16, #tpu.memory_space<vmem>>, %arg3: memref<16x4xbf16, #tpu.memory_space<vmem>>, %arg4: memref<1x4xf32, #tpu.memory_space<vmem>>, %arg5: memref<1x4xf32, #tpu.memory_space<vmem>>, %arg6: memref<9x4x4xbf16, #tpu.memory_space<vmem>>, %arg7: memref<1x4xf32, #tpu.memory_space<vmem>>, %arg8: memref<1x4xf32, #tpu.memory_space<vmem>>, %arg9: memref<4x16xbf16, #tpu.memory_space<vmem>>, %arg10: memref<1x16xf32, #tpu.memory_space<vmem>>, %arg11: memref<1x16xf32, #tpu.memory_space<vmem>>, %arg12: memref<128x16xbf16, #tpu.memory_space<vmem>>, %arg13: memref<10x18x4xbf16, #tpu.memory_space<vmem>>) attributes {dimension_semantics = [#tpu.dimension_semantics<parallel>, #tpu.dimension_semantics<parallel>], iteration_bounds = array<i64: 2, 2>, scalar_prefetch = 0 : i64, scratch_operands = 1 : i64, tpu.core_type = #tpu.core_type<tc>, window_params = [{transform_indices = @transform_0, window_bounds = array<i64: 256, 16>}, {pipeline_mode = #tpu.pipeline_mode<synchronous>, transform_indices = @transform_1, window_bounds = array<i64: 16, 4>}, {pipeline_mode = #tpu.pipeline_mode<synchronous>, transform_indices = @transform_2, window_bounds = array<i64: 1, 4>}, {pipeline_mode = #tpu.pipeline_mode<synchronous>, transform_indices = @transform_3, window_bounds = array<i64: 1, 4>}, {pipeline_mode = #tpu.pipeline_mode<synchronous>, transform_indices = @transform_4, window_bounds = array<i64: 9, 4, 4>}, {pipeline_mode = #tpu.pipeline_mode<synchronous>, transform_indices = @transform_5, window_bounds = array<i64: 1, 4>}, {pipeline_mode = #tpu.pipeline_mode<synchronous>, transform_indices = @transform_6, window_bounds = array<i64: 1, 4>}, {pipeline_mode = #tpu.pipeline_mode<synchronous>, transform_indices = @transform_7, window_bounds = array<i64: 4, 16>}, {pipeline_mode = #tpu.pipeline_mode<synchronous>, transform_indices = @transform_8, window_bounds = array<i64: 1, 16>}, {pipeline_mode = #tpu.pipeline_mode<synchronous>, transform_indices = @transform_9, window_bounds = array<i64: 1, 16>}, {transform_indices = @transform_10, window_bounds = array<i64: 128, 16>}]} {
    %c128_i32 = arith.constant 128 : i32
    %0 = arith.muli %arg1, %c128_i32 : i32
    %1 = tpu.assume_multiple %0, 128 : i32
    %cst = arith.constant 0.000000e+00 : bf16
    %2 = vector.broadcast %cst : bf16 to vector<10x1x4xbf16>
    %c0 = arith.constant 0 : index
    %c0_0 = arith.constant 0 : index
    %c0_1 = arith.constant 0 : index
    %3 = vector.load %arg13[%c0, %c0_0, %c0_1] : memref<10x18x4xbf16, #tpu.memory_space<vmem>>, vector<10x1x4xbf16>
    tpu.vector_store %arg13[%c0, %c0_0, %c0_1], %2 {strides = array<i32>} : memref<10x18x4xbf16, #tpu.memory_space<vmem>>, vector<10x1x4xbf16>,
    %c0_2 = arith.constant 0 : index
    %c17 = arith.constant 17 : index
    %c0_3 = arith.constant 0 : index
    %4 = vector.load %arg13[%c0_2, %c17, %c0_3] : memref<10x18x4xbf16, #tpu.memory_space<vmem>>, vector<10x1x4xbf16>
    tpu.vector_store %arg13[%c0_2, %c17, %c0_3], %2 {strides = array<i32>} : memref<10x18x4xbf16, #tpu.memory_space<vmem>>, vector<10x1x4xbf16>,
    %5 = arith.index_cast %1 : i32 to index
    %c0_4 = arith.constant 0 : index
    %6 = vector.load %arg2[%5, %c0_4] : memref<256x16xbf16, #tpu.memory_space<vmem>>, vector<128x16xbf16>
    %c0_5 = arith.constant 0 : index
    %c0_6 = arith.constant 0 : index
    %7 = vector.load %arg3[%c0_5, %c0_6] : memref<16x4xbf16, #tpu.memory_space<vmem>>, vector<16x4xbf16>
    %cst_7 = arith.constant dense<0.000000e+00> : vector<128x4xf32>
    %8 = tpu.matmul %6, %7, %cst_7 {dimension_numbers = #tpu.dot_dimension_numbers<[1], [0], [0], [1], [0, 0, 1, 1], [], []>} : vector<128x16xbf16>, vector<16x4xbf16>, vector<128x4xf32> -> vector<128x4xf32>
    %c0_8 = arith.constant 0 : index
    %c0_9 = arith.constant 0 : index
    %9 = vector.load %arg4[%c0_8, %c0_9] : memref<1x4xf32, #tpu.memory_space<vmem>>, vector<1x4xf32>
    %10 = vector.broadcast %9 : vector<1x4xf32> to vector<128x4xf32>
    %11 = arith.mulf %8, %10 : vector<128x4xf32>
    %c0_10 = arith.constant 0 : index
    %c0_11 = arith.constant 0 : index
    %12 = vector.load %arg5[%c0_10, %c0_11] : memref<1x4xf32, #tpu.memory_space<vmem>>, vector<1x4xf32>
    %13 = vector.broadcast %12 : vector<1x4xf32> to vector<128x4xf32>
    %14 = arith.addf %11, %13 : vector<128x4xf32>
    %cst_12 = arith.constant 0.000000e+00 : f32
    %15 = vector.broadcast %cst_12 : f32 to vector<128x4xf32>
    %16 = arith.maximumf %14, %15 : vector<128x4xf32>
    %17 = vector.shape_cast %16 : vector<128x4xf32> to vector<8x16x4xf32>
    %18 = arith.truncf %17 : vector<8x16x4xf32> to vector<8x16x4xbf16>
    %c1 = arith.constant 1 : index
    %c1_13 = arith.constant 1 : index
    %c0_14 = arith.constant 0 : index
    %19 = vector.load %arg13[%c1, %c1_13, %c0_14] : memref<10x18x4xbf16, #tpu.memory_space<vmem>>, vector<8x16x4xbf16>
    tpu.vector_store %arg13[%c1, %c1_13, %c0_14], %18 {strides = array<i32>} : memref<10x18x4xbf16, #tpu.memory_space<vmem>>, vector<8x16x4xbf16>,
    %c0_i32 = arith.constant 0 : i32
    %20 = arith.cmpi eq, %arg1, %c0_i32 : i32
    %21 = arith.extui %20 : i1 to i32
    %c0_i32_15 = arith.constant 0 : i32
    %22 = arith.cmpi ne, %21, %c0_i32_15 : i32
    scf.if %22 {
      %cst_93 = arith.constant 0.000000e+00 : bf16
      %110 = vector.broadcast %cst_93 : bf16 to vector<1x18x4xbf16>
      %c0_94 = arith.constant 0 : index
      %c0_95 = arith.constant 0 : index
      %c0_96 = arith.constant 0 : index
      %111 = vector.load %arg13[%c0_94, %c0_95, %c0_96] : memref<10x18x4xbf16, #tpu.memory_space<vmem>>, vector<1x18x4xbf16>
      tpu.vector_store %arg13[%c0_94, %c0_95, %c0_96], %110 {strides = array<i32>} : memref<10x18x4xbf16, #tpu.memory_space<vmem>>, vector<1x18x4xbf16>,
    } else {
    }
    %c0_i32_16 = arith.constant 0 : i32
    %23 = arith.cmpi sgt, %arg1, %c0_i32_16 : i32
    %24 = arith.extui %23 : i1 to i32
    %c0_i32_17 = arith.constant 0 : i32
    %25 = arith.cmpi ne, %24, %c0_i32_17 : i32
    scf.if %25 {
      %c16_i32 = arith.constant 16 : i32
      %110 = arith.subi %1, %c16_i32 : i32
      %111 = arith.index_cast %110 : i32 to index
      %c0_93 = arith.constant 0 : index
      %112 = vector.load %arg2[%111, %c0_93] : memref<256x16xbf16, #tpu.memory_space<vmem>>, vector<16x16xbf16>
      %c0_94 = arith.constant 0 : index
      %c0_95 = arith.constant 0 : index
      %113 = vector.load %arg3[%c0_94, %c0_95] : memref<16x4xbf16, #tpu.memory_space<vmem>>, vector<16x4xbf16>
      %cst_96 = arith.constant dense<0.000000e+00> : vector<16x4xf32>
      %114 = tpu.matmul %112, %113, %cst_96 {dimension_numbers = #tpu.dot_dimension_numbers<[1], [0], [0], [1], [0, 0, 1, 1], [], []>} : vector<16x16xbf16>, vector<16x4xbf16>, vector<16x4xf32> -> vector<16x4xf32>
      %c0_97 = arith.constant 0 : index
      %c0_98 = arith.constant 0 : index
      %115 = vector.load %arg4[%c0_97, %c0_98] : memref<1x4xf32, #tpu.memory_space<vmem>>, vector<1x4xf32>
      %116 = vector.broadcast %115 : vector<1x4xf32> to vector<16x4xf32>
      %117 = arith.mulf %114, %116 : vector<16x4xf32>
      %c0_99 = arith.constant 0 : index
      %c0_100 = arith.constant 0 : index
      %118 = vector.load %arg5[%c0_99, %c0_100] : memref<1x4xf32, #tpu.memory_space<vmem>>, vector<1x4xf32>
      %119 = vector.broadcast %118 : vector<1x4xf32> to vector<16x4xf32>
      %120 = arith.addf %117, %119 : vector<16x4xf32>
      %cst_101 = arith.constant 0.000000e+00 : f32
      %121 = vector.broadcast %cst_101 : f32 to vector<16x4xf32>
      %122 = arith.maximumf %120, %121 : vector<16x4xf32>
      %123 = vector.shape_cast %122 : vector<16x4xf32> to vector<1x16x4xf32>
      %124 = arith.truncf %123 : vector<1x16x4xf32> to vector<1x16x4xbf16>
      %c0_102 = arith.constant 0 : index
      %c1_103 = arith.constant 1 : index
      %c0_104 = arith.constant 0 : index
      %125 = vector.load %arg13[%c0_102, %c1_103, %c0_104] : memref<10x18x4xbf16, #tpu.memory_space<vmem>>, vector<1x16x4xbf16>
      tpu.vector_store %arg13[%c0_102, %c1_103, %c0_104], %124 {strides = array<i32>} : memref<10x18x4xbf16, #tpu.memory_space<vmem>>, vector<1x16x4xbf16>,
    } else {
    }
    %c1_i32 = arith.constant 1 : i32
    %26 = arith.cmpi eq, %arg1, %c1_i32 : i32
    %27 = arith.extui %26 : i1 to i32
    %c0_i32_18 = arith.constant 0 : i32
    %28 = arith.cmpi ne, %27, %c0_i32_18 : i32
    scf.if %28 {
      %cst_93 = arith.constant 0.000000e+00 : bf16
      %110 = vector.broadcast %cst_93 : bf16 to vector<1x18x4xbf16>
      %c9 = arith.constant 9 : index
      %c0_94 = arith.constant 0 : index
      %c0_95 = arith.constant 0 : index
      %111 = vector.load %arg13[%c9, %c0_94, %c0_95] : memref<10x18x4xbf16, #tpu.memory_space<vmem>>, vector<1x18x4xbf16>
      tpu.vector_store %arg13[%c9, %c0_94, %c0_95], %110 {strides = array<i32>} : memref<10x18x4xbf16, #tpu.memory_space<vmem>>, vector<1x18x4xbf16>,
    } else {
    }
    %c1_i32_19 = arith.constant 1 : i32
    %29 = arith.cmpi slt, %arg1, %c1_i32_19 : i32
    %30 = arith.extui %29 : i1 to i32
    %c0_i32_20 = arith.constant 0 : i32
    %31 = arith.cmpi ne, %30, %c0_i32_20 : i32
    scf.if %31 {
      %c128_i32_93 = arith.constant 128 : i32
      %110 = arith.addi %1, %c128_i32_93 : i32
      %111 = arith.index_cast %110 : i32 to index
      %c0_94 = arith.constant 0 : index
      %112 = vector.load %arg2[%111, %c0_94] : memref<256x16xbf16, #tpu.memory_space<vmem>>, vector<16x16xbf16>
      %c0_95 = arith.constant 0 : index
      %c0_96 = arith.constant 0 : index
      %113 = vector.load %arg3[%c0_95, %c0_96] : memref<16x4xbf16, #tpu.memory_space<vmem>>, vector<16x4xbf16>
      %cst_97 = arith.constant dense<0.000000e+00> : vector<16x4xf32>
      %114 = tpu.matmul %112, %113, %cst_97 {dimension_numbers = #tpu.dot_dimension_numbers<[1], [0], [0], [1], [0, 0, 1, 1], [], []>} : vector<16x16xbf16>, vector<16x4xbf16>, vector<16x4xf32> -> vector<16x4xf32>
      %c0_98 = arith.constant 0 : index
      %c0_99 = arith.constant 0 : index
      %115 = vector.load %arg4[%c0_98, %c0_99] : memref<1x4xf32, #tpu.memory_space<vmem>>, vector<1x4xf32>
      %116 = vector.broadcast %115 : vector<1x4xf32> to vector<16x4xf32>
      %117 = arith.mulf %114, %116 : vector<16x4xf32>
      %c0_100 = arith.constant 0 : index
      %c0_101 = arith.constant 0 : index
      %118 = vector.load %arg5[%c0_100, %c0_101] : memref<1x4xf32, #tpu.memory_space<vmem>>, vector<1x4xf32>
      %119 = vector.broadcast %118 : vector<1x4xf32> to vector<16x4xf32>
      %120 = arith.addf %117, %119 : vector<16x4xf32>
      %cst_102 = arith.constant 0.000000e+00 : f32
      %121 = vector.broadcast %cst_102 : f32 to vector<16x4xf32>
      %122 = arith.maximumf %120, %121 : vector<16x4xf32>
      %123 = vector.shape_cast %122 : vector<16x4xf32> to vector<1x16x4xf32>
      %124 = arith.truncf %123 : vector<1x16x4xf32> to vector<1x16x4xbf16>
      %c9 = arith.constant 9 : index
      %c1_103 = arith.constant 1 : index
      %c0_104 = arith.constant 0 : index
      %125 = vector.load %arg13[%c9, %c1_103, %c0_104] : memref<10x18x4xbf16, #tpu.memory_space<vmem>>, vector<1x16x4xbf16>
      tpu.vector_store %arg13[%c9, %c1_103, %c0_104], %124 {strides = array<i32>} : memref<10x18x4xbf16, #tpu.memory_space<vmem>>, vector<1x16x4xbf16>,
    } else {
    }
    %cst_21 = arith.constant 0.000000e+00 : f32
    %32 = vector.broadcast %cst_21 : f32 to vector<128x4xf32>
    %c0_22 = arith.constant 0 : index
    %c0_23 = arith.constant 0 : index
    %c0_24 = arith.constant 0 : index
    %33 = vector.load %arg13[%c0_22, %c0_23, %c0_24] : memref<10x18x4xbf16, #tpu.memory_space<vmem>>, vector<8x16x4xbf16>
    %34 = vector.shape_cast %33 : vector<8x16x4xbf16> to vector<128x4xbf16>
    %c0_25 = arith.constant 0 : index
    %c0_26 = arith.constant 0 : index
    %c0_27 = arith.constant 0 : index
    %35 = vector.load %arg6[%c0_25, %c0_26, %c0_27] : memref<9x4x4xbf16, #tpu.memory_space<vmem>>, vector<1x4x4xbf16>
    %36 = vector.shape_cast %35 : vector<1x4x4xbf16> to vector<4x4xbf16>
    %cst_28 = arith.constant dense<0.000000e+00> : vector<128x4xf32>
    %37 = tpu.matmul %34, %36, %cst_28 {dimension_numbers = #tpu.dot_dimension_numbers<[1], [0], [0], [1], [0, 0, 1, 1], [], []>} : vector<128x4xbf16>, vector<4x4xbf16>, vector<128x4xf32> -> vector<128x4xf32>
    %38 = arith.addf %32, %37 : vector<128x4xf32>
    %c0_29 = arith.constant 0 : index
    %c1_30 = arith.constant 1 : index
    %c0_31 = arith.constant 0 : index
    %39 = vector.load %arg13[%c0_29, %c1_30, %c0_31] : memref<10x18x4xbf16, #tpu.memory_space<vmem>>, vector<8x16x4xbf16>
    %40 = vector.shape_cast %39 : vector<8x16x4xbf16> to vector<128x4xbf16>
    %c1_32 = arith.constant 1 : index
    %c0_33 = arith.constant 0 : index
    %c0_34 = arith.constant 0 : index
    %41 = vector.load %arg6[%c1_32, %c0_33, %c0_34] : memref<9x4x4xbf16, #tpu.memory_space<vmem>>, vector<1x4x4xbf16>
    %42 = vector.shape_cast %41 : vector<1x4x4xbf16> to vector<4x4xbf16>
    %cst_35 = arith.constant dense<0.000000e+00> : vector<128x4xf32>
    %43 = tpu.matmul %40, %42, %cst_35 {dimension_numbers = #tpu.dot_dimension_numbers<[1], [0], [0], [1], [0, 0, 1, 1], [], []>} : vector<128x4xbf16>, vector<4x4xbf16>, vector<128x4xf32> -> vector<128x4xf32>
    %44 = arith.addf %38, %43 : vector<128x4xf32>
    %c0_36 = arith.constant 0 : index
    %c2 = arith.constant 2 : index
    %c0_37 = arith.constant 0 : index
    %45 = vector.load %arg13[%c0_36, %c2, %c0_37] : memref<10x18x4xbf16, #tpu.memory_space<vmem>>, vector<8x16x4xbf16>
    %46 = vector.shape_cast %45 : vector<8x16x4xbf16> to vector<128x4xbf16>
    %c2_38 = arith.constant 2 : index
    %c0_39 = arith.constant 0 : index
    %c0_40 = arith.constant 0 : index
    %47 = vector.load %arg6[%c2_38, %c0_39, %c0_40] : memref<9x4x4xbf16, #tpu.memory_space<vmem>>, vector<1x4x4xbf16>
    %48 = vector.shape_cast %47 : vector<1x4x4xbf16> to vector<4x4xbf16>
    %cst_41 = arith.constant dense<0.000000e+00> : vector<128x4xf32>
    %49 = tpu.matmul %46, %48, %cst_41 {dimension_numbers = #tpu.dot_dimension_numbers<[1], [0], [0], [1], [0, 0, 1, 1], [], []>} : vector<128x4xbf16>, vector<4x4xbf16>, vector<128x4xf32> -> vector<128x4xf32>
    %50 = arith.addf %44, %49 : vector<128x4xf32>
    %c1_42 = arith.constant 1 : index
    %c0_43 = arith.constant 0 : index
    %c0_44 = arith.constant 0 : index
    %51 = vector.load %arg13[%c1_42, %c0_43, %c0_44] : memref<10x18x4xbf16, #tpu.memory_space<vmem>>, vector<8x16x4xbf16>
    %52 = vector.shape_cast %51 : vector<8x16x4xbf16> to vector<128x4xbf16>
    %c3 = arith.constant 3 : index
    %c0_45 = arith.constant 0 : index
    %c0_46 = arith.constant 0 : index
    %53 = vector.load %arg6[%c3, %c0_45, %c0_46] : memref<9x4x4xbf16, #tpu.memory_space<vmem>>, vector<1x4x4xbf16>
    %54 = vector.shape_cast %53 : vector<1x4x4xbf16> to vector<4x4xbf16>
    %cst_47 = arith.constant dense<0.000000e+00> : vector<128x4xf32>
    %55 = tpu.matmul %52, %54, %cst_47 {dimension_numbers = #tpu.dot_dimension_numbers<[1], [0], [0], [1], [0, 0, 1, 1], [], []>} : vector<128x4xbf16>, vector<4x4xbf16>, vector<128x4xf32> -> vector<128x4xf32>
    %56 = arith.addf %50, %55 : vector<128x4xf32>
    %c1_48 = arith.constant 1 : index
    %c1_49 = arith.constant 1 : index
    %c0_50 = arith.constant 0 : index
    %57 = vector.load %arg13[%c1_48, %c1_49, %c0_50] : memref<10x18x4xbf16, #tpu.memory_space<vmem>>, vector<8x16x4xbf16>
    %58 = vector.shape_cast %57 : vector<8x16x4xbf16> to vector<128x4xbf16>
    %c4 = arith.constant 4 : index
    %c0_51 = arith.constant 0 : index
    %c0_52 = arith.constant 0 : index
    %59 = vector.load %arg6[%c4, %c0_51, %c0_52] : memref<9x4x4xbf16, #tpu.memory_space<vmem>>, vector<1x4x4xbf16>
    %60 = vector.shape_cast %59 : vector<1x4x4xbf16> to vector<4x4xbf16>
    %cst_53 = arith.constant dense<0.000000e+00> : vector<128x4xf32>
    %61 = tpu.matmul %58, %60, %cst_53 {dimension_numbers = #tpu.dot_dimension_numbers<[1], [0], [0], [1], [0, 0, 1, 1], [], []>} : vector<128x4xbf16>, vector<4x4xbf16>, vector<128x4xf32> -> vector<128x4xf32>
    %62 = arith.addf %56, %61 : vector<128x4xf32>
    %c1_54 = arith.constant 1 : index
    %c2_55 = arith.constant 2 : index
    %c0_56 = arith.constant 0 : index
    %63 = vector.load %arg13[%c1_54, %c2_55, %c0_56] : memref<10x18x4xbf16, #tpu.memory_space<vmem>>, vector<8x16x4xbf16>
    %64 = vector.shape_cast %63 : vector<8x16x4xbf16> to vector<128x4xbf16>
    %c5 = arith.constant 5 : index
    %c0_57 = arith.constant 0 : index
    %c0_58 = arith.constant 0 : index
    %65 = vector.load %arg6[%c5, %c0_57, %c0_58] : memref<9x4x4xbf16, #tpu.memory_space<vmem>>, vector<1x4x4xbf16>
    %66 = vector.shape_cast %65 : vector<1x4x4xbf16> to vector<4x4xbf16>
    %cst_59 = arith.constant dense<0.000000e+00> : vector<128x4xf32>
    %67 = tpu.matmul %64, %66, %cst_59 {dimension_numbers = #tpu.dot_dimension_numbers<[1], [0], [0], [1], [0, 0, 1, 1], [], []>} : vector<128x4xbf16>, vector<4x4xbf16>, vector<128x4xf32> -> vector<128x4xf32>
    %68 = arith.addf %62, %67 : vector<128x4xf32>
    %c2_60 = arith.constant 2 : index
    %c0_61 = arith.constant 0 : index
    %c0_62 = arith.constant 0 : index
    %69 = vector.load %arg13[%c2_60, %c0_61, %c0_62] : memref<10x18x4xbf16, #tpu.memory_space<vmem>>, vector<8x16x4xbf16>
    %70 = vector.shape_cast %69 : vector<8x16x4xbf16> to vector<128x4xbf16>
    %c6 = arith.constant 6 : index
    %c0_63 = arith.constant 0 : index
    %c0_64 = arith.constant 0 : index
    %71 = vector.load %arg6[%c6, %c0_63, %c0_64] : memref<9x4x4xbf16, #tpu.memory_space<vmem>>, vector<1x4x4xbf16>
    %72 = vector.shape_cast %71 : vector<1x4x4xbf16> to vector<4x4xbf16>
    %cst_65 = arith.constant dense<0.000000e+00> : vector<128x4xf32>
    %73 = tpu.matmul %70, %72, %cst_65 {dimension_numbers = #tpu.dot_dimension_numbers<[1], [0], [0], [1], [0, 0, 1, 1], [], []>} : vector<128x4xbf16>, vector<4x4xbf16>, vector<128x4xf32> -> vector<128x4xf32>
    %74 = arith.addf %68, %73 : vector<128x4xf32>
    %c2_66 = arith.constant 2 : index
    %c1_67 = arith.constant 1 : index
    %c0_68 = arith.constant 0 : index
    %75 = vector.load %arg13[%c2_66, %c1_67, %c0_68] : memref<10x18x4xbf16, #tpu.memory_space<vmem>>, vector<8x16x4xbf16>
    %76 = vector.shape_cast %75 : vector<8x16x4xbf16> to vector<128x4xbf16>
    %c7 = arith.constant 7 : index
    %c0_69 = arith.constant 0 : index
    %c0_70 = arith.constant 0 : index
    %77 = vector.load %arg6[%c7, %c0_69, %c0_70] : memref<9x4x4xbf16, #tpu.memory_space<vmem>>, vector<1x4x4xbf16>
    %78 = vector.shape_cast %77 : vector<1x4x4xbf16> to vector<4x4xbf16>
    %cst_71 = arith.constant dense<0.000000e+00> : vector<128x4xf32>
    %79 = tpu.matmul %76, %78, %cst_71 {dimension_numbers = #tpu.dot_dimension_numbers<[1], [0], [0], [1], [0, 0, 1, 1], [], []>} : vector<128x4xbf16>, vector<4x4xbf16>, vector<128x4xf32> -> vector<128x4xf32>
    %80 = arith.addf %74, %79 : vector<128x4xf32>
    %c2_72 = arith.constant 2 : index
    %c2_73 = arith.constant 2 : index
    %c0_74 = arith.constant 0 : index
    %81 = vector.load %arg13[%c2_72, %c2_73, %c0_74] : memref<10x18x4xbf16, #tpu.memory_space<vmem>>, vector<8x16x4xbf16>
    %82 = vector.shape_cast %81 : vector<8x16x4xbf16> to vector<128x4xbf16>
    %c8 = arith.constant 8 : index
    %c0_75 = arith.constant 0 : index
    %c0_76 = arith.constant 0 : index
    %83 = vector.load %arg6[%c8, %c0_75, %c0_76] : memref<9x4x4xbf16, #tpu.memory_space<vmem>>, vector<1x4x4xbf16>
    %84 = vector.shape_cast %83 : vector<1x4x4xbf16> to vector<4x4xbf16>
    %cst_77 = arith.constant dense<0.000000e+00> : vector<128x4xf32>
    %85 = tpu.matmul %82, %84, %cst_77 {dimension_numbers = #tpu.dot_dimension_numbers<[1], [0], [0], [1], [0, 0, 1, 1], [], []>} : vector<128x4xbf16>, vector<4x4xbf16>, vector<128x4xf32> -> vector<128x4xf32>
    %86 = arith.addf %80, %85 : vector<128x4xf32>
    %c0_78 = arith.constant 0 : index
    %c0_79 = arith.constant 0 : index
    %87 = vector.load %arg7[%c0_78, %c0_79] : memref<1x4xf32, #tpu.memory_space<vmem>>, vector<1x4xf32>
    %88 = vector.broadcast %87 : vector<1x4xf32> to vector<128x4xf32>
    %89 = arith.mulf %86, %88 : vector<128x4xf32>
    %c0_80 = arith.constant 0 : index
    %c0_81 = arith.constant 0 : index
    %90 = vector.load %arg8[%c0_80, %c0_81] : memref<1x4xf32, #tpu.memory_space<vmem>>, vector<1x4xf32>
    %91 = vector.broadcast %90 : vector<1x4xf32> to vector<128x4xf32>
    %92 = arith.addf %89, %91 : vector<128x4xf32>
    %cst_82 = arith.constant 0.000000e+00 : f32
    %93 = vector.broadcast %cst_82 : f32 to vector<128x4xf32>
    %94 = arith.maximumf %92, %93 : vector<128x4xf32>
    %95 = arith.truncf %94 : vector<128x4xf32> to vector<128x4xbf16>
    %c0_83 = arith.constant 0 : index
    %c0_84 = arith.constant 0 : index
    %96 = vector.load %arg9[%c0_83, %c0_84] : memref<4x16xbf16, #tpu.memory_space<vmem>>, vector<4x16xbf16>
    %cst_85 = arith.constant dense<0.000000e+00> : vector<128x16xf32>
    %97 = tpu.matmul %95, %96, %cst_85 {dimension_numbers = #tpu.dot_dimension_numbers<[1], [0], [0], [1], [0, 0, 1, 1], [], []>} : vector<128x4xbf16>, vector<4x16xbf16>, vector<128x16xf32> -> vector<128x16xf32>
    %c0_86 = arith.constant 0 : index
    %c0_87 = arith.constant 0 : index
    %98 = vector.load %arg10[%c0_86, %c0_87] : memref<1x16xf32, #tpu.memory_space<vmem>>, vector<1x16xf32>
    %99 = vector.broadcast %98 : vector<1x16xf32> to vector<128x16xf32>
    %100 = arith.mulf %97, %99 : vector<128x16xf32>
    %c0_88 = arith.constant 0 : index
    %c0_89 = arith.constant 0 : index
    %101 = vector.load %arg11[%c0_88, %c0_89] : memref<1x16xf32, #tpu.memory_space<vmem>>, vector<1x16xf32>
    %102 = vector.broadcast %101 : vector<1x16xf32> to vector<128x16xf32>
    %103 = arith.addf %100, %102 : vector<128x16xf32>
    %104 = arith.extf %6 : vector<128x16xbf16> to vector<128x16xf32>
    %105 = arith.addf %103, %104 : vector<128x16xf32>
    %cst_90 = arith.constant 0.000000e+00 : f32
    %106 = vector.broadcast %cst_90 : f32 to vector<128x16xf32>
    %107 = arith.maximumf %105, %106 : vector<128x16xf32>
    %108 = arith.truncf %107 : vector<128x16xf32> to vector<128x16xbf16>
    %c0_91 = arith.constant 0 : index
    %c0_92 = arith.constant 0 : index
    %109 = vector.load %arg12[%c0_91, %c0_92] : memref<128x16xbf16, #tpu.memory_space<vmem>>, vector<128x16xbf16>
    tpu.vector_store %arg12[%c0_91, %c0_92], %108 {strides = array<i32>} : memref<128x16xbf16, #tpu.memory_space<vmem>>, vector<128x16xbf16>,
    return
  }
  func.func @transform_0(%arg0: i32, %arg1: i32) -> (i32, i32) {
    %c0_i32 = arith.constant 0 : i32
    %c0_i32_0 = arith.constant 0 : i32
    return %arg0, %c0_i32 : i32, i32
  }
  func.func @transform_1(%arg0: i32, %arg1: i32) -> (i32, i32) {
    %c0_i32 = arith.constant 0 : i32
    %c0_i32_0 = arith.constant 0 : i32
    %c0_i32_1 = arith.constant 0 : i32
    return %c0_i32, %c0_i32_0 : i32, i32
  }
  func.func @transform_2(%arg0: i32, %arg1: i32) -> (i32, i32) {
    %c0_i32 = arith.constant 0 : i32
    %c0_i32_0 = arith.constant 0 : i32
    %c0_i32_1 = arith.constant 0 : i32
    return %c0_i32, %c0_i32_0 : i32, i32
  }
  func.func @transform_3(%arg0: i32, %arg1: i32) -> (i32, i32) {
    %c0_i32 = arith.constant 0 : i32
    %c0_i32_0 = arith.constant 0 : i32
    %c0_i32_1 = arith.constant 0 : i32
    return %c0_i32, %c0_i32_0 : i32, i32
  }
  func.func @transform_4(%arg0: i32, %arg1: i32) -> (i32, i32, i32) {
    %c0_i32 = arith.constant 0 : i32
    %c0_i32_0 = arith.constant 0 : i32
    %c0_i32_1 = arith.constant 0 : i32
    %c0_i32_2 = arith.constant 0 : i32
    return %c0_i32, %c0_i32_0, %c0_i32_1 : i32, i32, i32
  }
  func.func @transform_5(%arg0: i32, %arg1: i32) -> (i32, i32) {
    %c0_i32 = arith.constant 0 : i32
    %c0_i32_0 = arith.constant 0 : i32
    %c0_i32_1 = arith.constant 0 : i32
    return %c0_i32, %c0_i32_0 : i32, i32
  }
  func.func @transform_6(%arg0: i32, %arg1: i32) -> (i32, i32) {
    %c0_i32 = arith.constant 0 : i32
    %c0_i32_0 = arith.constant 0 : i32
    %c0_i32_1 = arith.constant 0 : i32
    return %c0_i32, %c0_i32_0 : i32, i32
  }
  func.func @transform_7(%arg0: i32, %arg1: i32) -> (i32, i32) {
    %c0_i32 = arith.constant 0 : i32
    %c0_i32_0 = arith.constant 0 : i32
    %c0_i32_1 = arith.constant 0 : i32
    return %c0_i32, %c0_i32_0 : i32, i32
  }
  func.func @transform_8(%arg0: i32, %arg1: i32) -> (i32, i32) {
    %c0_i32 = arith.constant 0 : i32
    %c0_i32_0 = arith.constant 0 : i32
    %c0_i32_1 = arith.constant 0 : i32
    return %c0_i32, %c0_i32_0 : i32, i32
  }
  func.func @transform_9(%arg0: i32, %arg1: i32) -> (i32, i32) {
    %c0_i32 = arith.constant 0 : i32
    %c0_i32_0 = arith.constant 0 : i32
    %c0_i32_1 = arith.constant 0 : i32
    return %c0_i32, %c0_i32_0 : i32, i32
  }
  func.func @transform_10(%arg0: i32, %arg1: i32) -> (i32, i32) {
    %c2_i32 = arith.constant 2 : i32
    %0 = arith.muli %arg0, %c2_i32 : i32
    %1 = arith.addi %0, %arg1 : i32
    %c0_i32 = arith.constant 0 : i32
    %c0_i32_0 = arith.constant 0 : i32
    return %1, %c0_i32 : i32, i32
  }
}

</mosaic_0001>

<bundles_post_ra>
// kernel: tpu_custom_call.1
= control target key start
LH: loop header
LB: loop body
LE: loop exit
PB: predicated region body
PF: predicated region fallthrough
CT: control target
= control target key end

     0   :  { %s5095_s13 = smov 0   ;;  %s5097_s14 = smov 0   ;;  %s6324_s0 = inlined_call_operand.vmem [shape: bf16[512,16], index: 0, kind: input, shape index: {}]   ;;  %s6325_s1 = inlined_call_operand.vmem [shape: bf16[16,4], index: 1, kind: input, shape index: {}]   ;;  %s6326_s2 = inlined_call_operand.vmem [shape: f32[1,4], index: 2, kind: input, shape index: {}]   ;;  %s6327_s3 = inlined_call_operand.vmem [shape: f32[1,4], index: 3, kind: input, shape index: {}]   ;;  %s6328_s4 = inlined_call_operand.vmem [shape: bf16[9,4,4], index: 4, kind: input, shape index: {}]   ;;  %s6329_s5 = inlined_call_operand.vmem [shape: f32[1,4], index: 5, kind: input, shape index: {}]   ;;  %s6330_s6 = inlined_call_operand.vmem [shape: f32[1,4], index: 6, kind: input, shape index: {}]   ;;  %s6331_s7 = inlined_call_operand.vmem [shape: bf16[4,16], index: 7, kind: input, shape index: {}]   ;;  %s6332_s8 = inlined_call_operand.vmem [shape: f32[1,16], index: 8, kind: input, shape index: {}]   ;;  %s6333_s9 = inlined_call_operand.vmem [shape: f32[1,16], index: 9, kind: input, shape index: {}]   ;;  %s6334_s10 = inlined_call_operand.vmem [shape: bf16[512,16], index: 10, kind: output, shape index: {}]  }
   0x1   :  { %s5099_s15 = smov 0   ;;  %s5101_s16 = smov 0  }
   0x2   :  { %s5103_s17 = smov 0  }
   0x3 LB: > { %s29_s18 = sadd.s32 1, %s5024_s15  ;;  %s32_s19 = sadd.s32 1, %s5028_s16  ;;  %s5032_s17 = sphi %s5103_s17, %s20_s17   ;;  %s5028_s16 = sphi %s5101_s16, %s6396_s16   ;;  %s5024_s15 = sphi %s5099_s15, %s6395_s15   ;;  %s5020_s14 = sphi %s5097_s14, %s6394_s14   ;;  %s5016_s13 = sphi %s5095_s13, %s6393_s13  }
   0x4   : > { %p30_p0 = scmp.ge.s32.totalorder %s29_s18, 2  ;;  %p4144_p1 = scmp.ge.s32.totalorder %s5032_s17, 1 }
   0x5   : > { %p329_p2 = scmp.lt.s32.totalorder %s5032_s17, 5 }
   0x6   : > { %s6398_s18 = smov (%p30_p0, %s29_s18), 0  ;;  %s6400_s19 = smov (!%p30_p0, %s32_s19), %s5028_s16 }
   0x7   : > { %p330_p3 = pnand %p4144_p1, %p329_p2  ;;  %p34_p4 = scmp.ge.s32.totalorder %s6400_s19, 2 }
   0x9   : > { %s6402_s19 = smov (%p34_p4, %s6400_s19), 0  ;;  %333 = sbr.rel (%p330_p3) target bundleno = 1428 (0x594), region = 60 }
  0x10   : > { %s4147_s20 = sshll.u32 %s5020_s14, 1  ;;  %v4949_v0 = vld [vmem:[%s6325_s1] sm:$0xff]   ;;  %s4145_s24 = sshll.u32 %s5020_s14, 5  ;;  %vm387_vm0 = vcmask 24576   ;;  %vm388_vm1 = vsmask.f32 256 }
  0x11   : > { %s376_s23 = sadd.s32 %s5016_s13, %s4147_s20  ;;  %4553 = vmatprep.subr.bf16.mxu0 %v4949_v0  ;;  %4763 = vmatprep.subr.bf16.mxu1 %v4949_v0  ;;  %p370_p5 = scmp.lt.s32.totalorder %s4145_s24, 63  ;;  %vm5137_vm2 = vmand %vm387_vm0, %vm388_vm1  ;;  %v390_v2 = vld [vmem:[#allocation2] sm:$0x1]  ;;  %v396_v3 = vld [vmem:[#allocation2 + $0x18] sm:$0x1]  ;;  %vm520_vm5 = vcmask 130048  }
  0x12   : > { %s4148_s25 = sshll.u32 %s376_s23, 4  ;;  %4554 = vmatpush3.bf16.msra.mxu0 %v4949_v0  ;;  %4764 = vmatpush3.bf16.msra.mxu1 %v4949_v0  ;;  %s5142_s26 = sshll.u32 %s5016_s13, 7  ;;  %v391_v4 = vsel %vm5137_vm2, 0, %v390_v2  ;;  %v397_v5 = vsel %vm5137_vm2, 0, %v396_v3  ;;  %v417_v6 = vld [vmem:[#allocation2 + $0x6c] sm:$0x1] }
  0x13   : > { %p378_p6 = scmp.lt.s32.totalorder %s4148_s25, 63  ;;  %s6404_s24 = smov (!%p370_p5, %s4145_s24), 63  ;;  %392 = vst [vmem:[#allocation2] sm:$0x1] %v391_v4  ;;  %398 = vst [vmem:[#allocation2 + $0x18] sm:$0x1] %v397_v5 }
  0x14   : > { %v418_v7 = vsel %vm5137_vm2, 0, %v417_v6  ;;  %vm420_vm3 = vsmask.f32 7938  ;;  %v422_v8 = vld [vmem:[#allocation2 + $0x8] sm:$0x1]  ;;  %s4146_s27 = sshll.u32 %s6404_s24, 2 }
  0x15   : > { %s6406_s25 = smov (!%p378_p6, %s4148_s25), 63  ;;  %419 = vst [vmem:[#allocation2 + $0x6c] sm:$0x1] %v418_v7  ;;  %vm5152_vm4 = vmand %vm387_vm0, %vm420_vm3  ;;  %v449_v10 = vld [vmem:[#allocation2 + $0x74] sm:$0x1]  ;;  %s452_s28 = sshra.s32 %s5142_s26, 3 }
  0x16   : > { %v423_v11 = vsel %vm5152_vm4, 0, %v422_v8  ;;  %v450_v12 = vsel %vm5152_vm4, 0, %v449_v10  ;;  %s4149_s29 = sshll.u32 %s6406_s25, 2  ;;  %s5164_s12 = scalar_lea.vmem %s6324_s0, %s4146_s27  ;;  %v408_v21 = vld [vmem:[#allocation2 + $0x48] sm:$0x1]  ;;  %vm915_vm6 = vcmask 27648  }
  0x17   : > { %424 = vst [vmem:[#allocation2 + $0x8] sm:$0x1] %v423_v11  ;;  %451 = vst [vmem:[#allocation2 + $0x74] sm:$0x1] %v450_v12  ;;  %s5169_s21 = scalar_lea.vmem %s6334_s10, %s4149_s29  ;;  %s4151_s22 = sshll.u32 %s452_s28, 2  ;;  %v409_v22 = vsel %vm5137_vm2, 0, %v408_v21 }
  0x18   : > { %s455_s23 = scalar_lea.vmem %s5164_s12, %s4151_s22  ;;  %v393_v23 = vld [vmem:[#allocation2 + $0xc] sm:$0x1]  ;;  %v405_v24 = vld [vmem:[#allocation2 + $0x3c] sm:$0x1]  ;;  %410 = vst [vmem:[#allocation2 + $0x48] sm:$0x1] %v409_v22  ;;  %vm5276_vm8 = vmand %vm915_vm6, %vm420_vm3 }
  0x19   : > { %v5172_v13 = vld [vmem:[%s455_s23] sm:$0xff]   ;;  %v5176_v15 = vld [vmem:[%s455_s23 + $0x8] sm:$0xff]   ;;  %v5180_v17 = vld [vmem:[%s455_s23 + $0x10] sm:$0xff]   ;;  %v394_v25 = vsel %vm5137_vm2, 0, %v393_v23  ;;  %v406_v26 = vsel %vm5137_vm2, 0, %v405_v24  ;;  %p4187_p7 = scmp.ne.s32.totalorder %s5016_s13, 0 }
  0x1a   : > { %6358 = vst [vmem:[#allocation3_spill] sm:$0xff] %v5172_v13  ;;  %v5174_v14 = vld [vmem:[%s455_s23 + $0x20] sm:$0xff]   ;;  %6360 = vst [vmem:[#allocation5_spill] sm:$0xff] %v5176_v15  ;;  %v5178_v16 = vld [vmem:[%s455_s23 + $0x28] sm:$0xff]   ;;  %4555 = vmatprep.mubr.msk.bf16.mxu0 %vm520_vm5, %v5172_v13  ;;  %vm752_vm7 = vsmask.f32 4368 }
  0x1b   : > { %6359 = vst [vmem:[#allocation4_spill] sm:$0xff] %v5174_v14  ;;  %6361 = vst [vmem:[#allocation6_spill] sm:$0xff] %v5178_v16  ;;  %v5182_v18 = vld [vmem:[%s455_s23 + $0x30] sm:$0xff]   ;;  %4563 = vmatprep.mubr.msk.bf16.mxu1 %vm520_vm5, %v5174_v14  ;;  %4556 = vmatmul.mubr.msk.bf16.vlgmr.msra.gmra.mrb[0].mxu0 %vm520_vm5, %v5176_v15  ;;  %v5196_v19 = vld [vmem:[%s455_s23 + $0x18] sm:$0xff]  }
  0x1c   : > { %6362 = vst [vmem:[#allocation7_spill] sm:$0xff] %v5180_v17  ;;  %6363 = vst [vmem:[#allocation8_spill] sm:$0xff] %v5182_v18  ;;  %4564 = vmatmul.mubr.msk.bf16.vlgmr.msra.gmra.mrb[0].mxu1 %vm520_vm5, %v5178_v16  ;;  %4559 = vmatprep.mubr.msk.bf16.mxu0 %vm520_vm5, %v5180_v17  ;;  %v5198_v20 = vld [vmem:[%s455_s23 + $0x38] sm:$0xff]   ;;  %v428_v27 = vld [vmem:[#allocation2 + $0x20] sm:$0x1] }
  0x1d   : > { %4567 = vmatprep.mubr.msk.bf16.mxu1 %vm520_vm5, %v5182_v18  ;;  %6364 = vst [vmem:[#allocation9_spill] sm:$0xff] %v5196_v19  ;;  %6365 = vst [vmem:[#allocation10_spill] sm:$0xff] %v5198_v20  ;;  %v429_v28 = vsel %vm5152_vm4, 0, %v428_v27  ;;  %v440_v29 = vld [vmem:[#allocation2 + $0x50] sm:$0x1] }
  0x1e   : > { %395 = vst [vmem:[#allocation2 + $0xc] sm:$0x1] %v394_v25  ;;  %407 = vst [vmem:[#allocation2 + $0x3c] sm:$0x1] %v406_v26  ;;  %v441_v30 = vsel %vm5152_vm4, 0, %v440_v29 }
  0x1f   : > { %430 = vst [vmem:[#allocation2 + $0x20] sm:$0x1] %v429_v28  ;;  %442 = vst [vmem:[#allocation2 + $0x50] sm:$0x1] %v441_v30  ;;  %v425_v31 = vld [vmem:[#allocation2 + $0x14] sm:$0x1] }
  0x20   : > { %v426_v32 = vsel %vm5152_vm4, 0, %v425_v31  ;;  %v437_v33 = vld [vmem:[#allocation2 + $0x44] sm:$0x1]  ;;  %v402_v35 = vld [vmem:[#allocation2 + $0x30] sm:$0x1]  ;;  %vm5296_vm9 = vmor %vm388_vm1, %vm752_vm7 }
  0x21   : > { %427 = vst [vmem:[#allocation2 + $0x14] sm:$0x1] %v426_v32  ;;  %v438_v34 = vsel %vm5152_vm4, 0, %v437_v33  ;;  %v403_v36 = vsel %vm5137_vm2, 0, %v402_v35  ;;  %v414_v37 = vld [vmem:[#allocation2 + $0x60] sm:$0x1] }
  0x22   : > { %439 = vst [vmem:[#allocation2 + $0x44] sm:$0x1] %v438_v34  ;;  %404 = vst [vmem:[#allocation2 + $0x30] sm:$0x1] %v403_v36  ;;  %v415_v38 = vsel %vm5137_vm2, 0, %v414_v37 }
  0x23   : > { %4560 = vmatmul.mubr.msk.bf16.gmra.mrb[4].mxu0 %vm520_vm5, %v5196_v19  ;;  %v399_v39 = vld [vmem:[#allocation2 + $0x24] sm:$0x1]  ;;  %416 = vst [vmem:[#allocation2 + $0x60] sm:$0x1] %v415_v38  ;;  %v411_v41 = vld [vmem:[#allocation2 + $0x54] sm:$0x1] }
  0x24   : > { %4568 = vmatmul.mubr.msk.bf16.gmra.mrb[4].mxu1 %vm520_vm5, %v5198_v20  ;;  %v400_v40 = vsel %vm5137_vm2, 0, %v399_v39  ;;  %v412_v42 = vsel %vm5137_vm2, 0, %v411_v41  ;;  %v434_v43 = vld [vmem:[#allocation2 + $0x38] sm:$0x1]  ;;  %v446_v45 = vld [vmem:[#allocation2 + $0x68] sm:$0x1] }
  0x25   : > { %401 = vst [vmem:[#allocation2 + $0x24] sm:$0x1] %v400_v40  ;;  %413 = vst [vmem:[#allocation2 + $0x54] sm:$0x1] %v412_v42  ;;  %v435_v44 = vsel %vm5152_vm4, 0, %v434_v43  ;;  %v447_v46 = vsel %vm5152_vm4, 0, %v446_v45 }
  0x26   : > { %436 = vst [vmem:[#allocation2 + $0x38] sm:$0x1] %v435_v44  ;;  %v431_v47 = vld [vmem:[#allocation2 + $0x2c] sm:$0x1]  ;;  %448 = vst [vmem:[#allocation2 + $0x68] sm:$0x1] %v447_v46 }
  0x27   : > { %v432_v48 = vsel %vm5152_vm4, 0, %v431_v47  ;;  %v443_v49 = vld [vmem:[#allocation2 + $0x5c] sm:$0x1]  ;;  %v5237_v51 = vld [vmem:[%s6326_s2] ss:$0 sm:$0xff] }
  0x28   : > { %433 = vst [vmem:[#allocation2 + $0x2c] sm:$0x1] %v432_v48  ;;  %v444_v50 = vsel %vm5152_vm4, 0, %v443_v49  ;;  %v5242_v53 = vld [vmem:[%s6327_s3] ss:$0 sm:$0xff] }
  0x29   : > { %445 = vst [vmem:[#allocation2 + $0x5c] sm:$0x1] %v444_v50 }
  0xee   : > { %v4557_v52 = vpop.f32.mrb[0].mxu0 }
  0xef   : > { %v4565_v54 = vpop.f32.mrb[0].mxu1  ;;  %v651_v55 = vmul.f32 %v4557_v52, %v5237_v51  ;;  %v579_v57 = vpop.f32.mrb[1].mxu0 }
  0xf0   : > { %v659_v56 = vmul.f32 %v4565_v54, %v5237_v51  ;;  %v611_v58 = vpop.f32.mrb[1].mxu1  ;;  %v649_v59 = vmul.f32 %v5237_v51, %v579_v57  ;;  %v4558_v61 = vpop.f32.mrb[2].mxu0  ;;  %v925_v57 = vld [vmem:[#allocation2 + $0x18] sm:$0xf] }
  0xf1   : > { %v657_v60 = vmul.f32 %v5237_v51, %v611_v58  ;;  %v4566_v62 = vpop.f32.mrb[2].mxu1  ;;  %v674_v63 = vadd.f32 %v5242_v53, %v651_v55  ;;  %v652_v2 = vmul.f32 %v4558_v61, %v5237_v51  ;;  %v582_v4 = vpop.f32.mrb[3].mxu0  ;;  %v953_v58 = vld [vmem:[#allocation2 + $0x48] sm:$0xf] }
  0xf2   : > { %v682_v0 = vadd.f32 %v5242_v53, %v659_v56  ;;  %v660_v3 = vmul.f32 %v4566_v62, %v5237_v51  ;;  %v614_v5 = vpop.f32.mrb[3].mxu1  ;;  %v672_v6 = vadd.f32 %v5242_v53, %v649_v59  ;;  %v650_v8 = vmul.f32 %v5237_v51, %v582_v4  ;;  %v917_v4 = vld [vmem:[#allocation2 + $0xc] sm:$0xf] }
  0xf3   : > { %v680_v7 = vadd.f32 %v5242_v53, %v657_v60  ;;  %v658_v9 = vmul.f32 %v5237_v51, %v614_v5  ;;  %v690_v10 = vmax.f32 %v674_v63, 0.0  ;;  %v675_v12 = vadd.f32 %v5242_v53, %v652_v2  ;;  %v946_v5 = vld [vmem:[#allocation2 + $0x3c] sm:$0xf] }
  0xf4   : > { %v698_v11 = vmax.f32 %v682_v0, 0.0  ;;  %v683_v21 = vadd.f32 %v5242_v53, %v660_v3  ;;  %v688_v22 = vmax.f32 %v672_v6, 0.0  ;;  %v673_v24 = vadd.f32 %v5242_v53, %v650_v8 }
  0xf5   : > { %v696_v23 = vmax.f32 %v680_v7, 0.0  ;;  %v681_v25 = vadd.f32 %v5242_v53, %v658_v9  ;;  %v4416_v26 = vpack.c.bf16 %v690_v10, %v690_v10  ;;  %v691_v28 = vmax.f32 %v675_v12, 0.0 }
  0xf6   : > { %v4424_v27 = vpack.c.bf16 %v698_v11, %v698_v11  ;;  %v699_v29 = vmax.f32 %v683_v21, 0.0  ;;  %v4414_v30 = vpack.c.bf16 %v688_v22, %v688_v22  ;;  %v689_v32 = vmax.f32 %v673_v24, 0.0  ;;  %v4561_v34 = vpop.f32.mrb[4].mxu0 }
  0xf7   : > { %v4422_v31 = vpack.c.bf16 %v696_v23, %v696_v23  ;;  %v697_v33 = vmax.f32 %v681_v25, 0.0  ;;  %v4569_v35 = vpop.f32.mrb[4].mxu1  ;;  %v772_v36 = vshrl.u32 %v4416_v26, 16  ;;  %v775_v37 = vshll.u32 %v4416_v26, 16  ;;  %v5260_v40 = vpop.f32.mrb[5].mxu0 }
  0xf8   : > { %v840_v38 = vshrl.u32 %v4424_v27, 16  ;;  %v843_v39 = vshll.u32 %v4424_v27, 16  ;;  %v5262_v41 = vpop.f32.mrb[5].mxu1  ;;  %v755_v42 = vshrl.u32 %v4414_v30, 16  ;;  %v758_v43 = vshll.u32 %v4414_v30, 16  ;;  %v5264_v46 = vpop.f32.mrb[6].mxu0 }
  0xf9   : > { %v823_v44 = vshrl.u32 %v4422_v31, 16  ;;  %v826_v45 = vshll.u32 %v4422_v31, 16  ;;  %v5266_v47 = vpop.f32.mrb[6].mxu1  ;;  %v774_v48 = vrot.slane %v772_v36, 7  ;;  %v4417_v50 = vpack.c.bf16 %v691_v28, %v691_v28  ;;  %v5270_v54 = vpop.f32.mrb[7].mxu0 }
  0xfa   : > { %v5268_v49 = vrot.slane %v840_v38, 7  ;;  %v4425_v52 = vpack.c.bf16 %v699_v29, %v699_v29  ;;  %v5272_v55 = vpop.f32.mrb[7].mxu1  ;;  %v757_v59 = vrot.slane %v755_v42, 7  ;;  %v4415_v61 = vpack.c.bf16 %v689_v32, %v689_v32  ;;  %v929_v31 = vld [vmem:[#allocation2 + $0x20] sm:$0x1] }
  0xfb   : > { %v5280_v60 = vrot.slane %v823_v44, 7  ;;  %v4423_v62 = vpack.c.bf16 %v697_v33, %v697_v33  ;;  %v777_v63 = vor.u32 %v775_v37, %v774_v48  ;;  %v778_v0 = vrot.slane %v774_v48, 4  ;;  %v957_v42 = vld [vmem:[#allocation2 + $0x50] sm:$0x1] }
  0xfc   : > { %v845_v2 = vor.u32 %v843_v39, %v5268_v49  ;;  %v846_v3 = vrot.slane %v5268_v49, 4  ;;  %v760_v6 = vor.u32 %v758_v43, %v757_v59  ;;  %v761_v7 = vrot.slane %v757_v59, 4  ;;  %v922_v49 = vld [vmem:[#allocation2 + $0x14] sm:$0x1]  ;;  %v950_v59 = vld [vmem:[#allocation2 + $0x44] sm:$0x1] }
  0xfd   : > { %v828_v8 = vor.u32 %v826_v45, %v5280_v60  ;;  %v829_v9 = vrot.slane %v5280_v60, 4  ;;  %v926_v10 = vsel %vm5276_vm8, %v777_v63, %v925_v57  ;;  %v780_v12 = vshrl.u32 %v4417_v50, 16 }
  0xfe   : > { %v954_v11 = vsel %vm5276_vm8, %v845_v2, %v953_v58  ;;  %v783_v21 = vshll.u32 %v4417_v50, 16  ;;  %927 = vst [vmem:[#allocation2 + $0x18] sm:$0xf] %v926_v10  ;;  %v918_v22 = vsel %vm5276_vm8, %v760_v6, %v917_v4  ;;  %v848_v24 = vshrl.u32 %v4425_v52, 16 }
  0xff   : > { %955 = vst [vmem:[#allocation2 + $0x48] sm:$0xf] %v954_v11  ;;  %v947_v23 = vsel %vm5276_vm8, %v828_v8, %v946_v5  ;;  %v851_v25 = vshll.u32 %v4425_v52, 16  ;;  %919 = vst [vmem:[#allocation2 + $0xc] sm:$0xf] %v918_v22  ;;  %v782_v26 = vrot.slane %v780_v12, 7  ;;  %v655_v36 = vmul.f32 %v4561_v34, %v5237_v51 }
 0x100   : > { %948 = vst [vmem:[#allocation2 + $0x3c] sm:$0xf] %v947_v23  ;;  %v763_v27 = vshrl.u32 %v4415_v61, 16  ;;  %v766_v28 = vshll.u32 %v4415_v61, 16  ;;  %v831_v29 = vshrl.u32 %v4423_v62, 16  ;;  %v850_v32 = vrot.slane %v848_v24, 7 }
 0x101   : > { %v834_v33 = vshll.u32 %v4423_v62, 16  ;;  %v663_v37 = vmul.f32 %v4569_v35, %v5237_v51  ;;  %v785_v38 = vor.u32 %v783_v21, %v782_v26  ;;  %v787_v39 = vrot.slane %v782_v26, 4 }
 0x102   : > { %v765_v43 = vrot.slane %v763_v27, 7  ;;  %v833_v44 = vrot.slane %v831_v29, 7  ;;  %v853_v45 = vor.u32 %v851_v25, %v850_v32  ;;  %v855_v48 = vrot.slane %v850_v32, 4 }
 0x103   : > { %v678_v50 = vadd.f32 %v5242_v53, %v655_v36  ;;  %v686_v52 = vadd.f32 %v5242_v53, %v663_v37  ;;  %v786_v57 = vsel %vm5296_vm9, %v778_v0, %v785_v38  ;;  %v930_v34 = vsel %vm5137_vm2, %v787_v39, %v929_v31  ;;  %v967_v36 = vld [vmem:[#allocation2 + $0x60] sm:$0xf] }
 0x104   : > { %v768_v58 = vor.u32 %v766_v28, %v765_v43  ;;  %v770_v35 = vrot.slane %v765_v43, 4  ;;  %928 = vst.msk [vmem:[#allocation2 + $0x1c] sm:$0xf] %vm915_vm6, %v786_v57  ;;  %931 = vst [vmem:[#allocation2 + $0x20] sm:$0x1] %v930_v34  ;;  %v854_v60 = vsel %vm5296_vm9, %v846_v3, %v853_v45  ;;  %v958_v61 = vsel %vm5137_vm2, %v855_v48, %v957_v42 }
 0x105   : > { %v836_v62 = vor.u32 %v834_v33, %v833_v44  ;;  %v838_v63 = vrot.slane %v833_v44, 4  ;;  %956 = vst.msk [vmem:[#allocation2 + $0x4c] sm:$0xf] %vm915_vm6, %v854_v60  ;;  %959 = vst [vmem:[#allocation2 + $0x50] sm:$0x1] %v958_v61  ;;  %v694_v4 = vmax.f32 %v678_v50, 0.0  ;;  %v653_v8 = vmul.f32 %v5237_v51, %v5260_v40 }
 0x106   : > { %v769_v0 = vsel %vm5296_vm9, %v761_v7, %v768_v58  ;;  %v923_v2 = vsel %vm5137_vm2, %v770_v35, %v922_v49  ;;  %v702_v5 = vmax.f32 %v686_v52, 0.0  ;;  %v661_v7 = vmul.f32 %v5237_v51, %v5262_v41  ;;  %v960_v60 = vld [vmem:[#allocation2 + $0x54] sm:$0xf] }
 0x107   : > { %921 = vst.msk [vmem:[#allocation2 + $0x10] sm:$0xf] %vm915_vm6, %v769_v0  ;;  %924 = vst [vmem:[#allocation2 + $0x14] sm:$0x1] %v923_v2  ;;  %v837_v3 = vsel %vm5296_vm9, %v829_v9, %v836_v62  ;;  %v951_v6 = vsel %vm5137_vm2, %v838_v63, %v950_v59  ;;  %v4420_v10 = vpack.c.bf16 %v694_v4, %v694_v4  ;;  %v932_v59 = vld [vmem:[#allocation2 + $0x24] sm:$0xf] }
 0x108   : > { %949 = vst.msk [vmem:[#allocation2 + $0x40] sm:$0xf] %vm915_vm6, %v837_v3  ;;  %952 = vst [vmem:[#allocation2 + $0x44] sm:$0x1] %v951_v6  ;;  %v4428_v11 = vpack.c.bf16 %v702_v5, %v702_v5  ;;  %v656_v12 = vmul.f32 %v5264_v46, %v5237_v51  ;;  %v664_v9 = vmul.f32 %v5266_v47, %v5237_v51 }
 0x109   : > { %v676_v21 = vadd.f32 %v5242_v53, %v653_v8  ;;  %v684_v22 = vadd.f32 %v5242_v53, %v661_v7  ;;  %v654_v40 = vmul.f32 %v5237_v51, %v5270_v54  ;;  %v662_v41 = vmul.f32 %v5237_v51, %v5272_v55  ;;  %v939_v54 = vld [vmem:[#allocation2 + $0x30] sm:$0xf] }
 0x10a   : > { %v806_v23 = vshrl.u32 %v4420_v10, 16  ;;  %v809_v24 = vshll.u32 %v4420_v10, 16  ;;  %v874_v25 = vshrl.u32 %v4428_v11, 16  ;;  %v877_v26 = vshll.u32 %v4428_v11, 16 }
 0x10b   : > { %v692_v27 = vmax.f32 %v676_v21, 0.0  ;;  %v700_v28 = vmax.f32 %v684_v22, 0.0  ;;  %v679_v46 = vadd.f32 %v5242_v53, %v656_v12  ;;  %v687_v47 = vadd.f32 %v5242_v53, %v664_v9  ;;  %v943_v9 = vld [vmem:[#allocation2 + $0x38] sm:$0x1]  ;;  %v971_v21 = vld [vmem:[#allocation2 + $0x68] sm:$0x1] }
 0x10c   : > { %v808_v29 = vrot.slane %v806_v23, 7  ;;  %v876_v31 = vrot.slane %v874_v25, 7  ;;  %v677_v32 = vadd.f32 %v5242_v53, %v654_v40  ;;  %v685_v33 = vadd.f32 %v5242_v53, %v662_v41 }
 0x10d   : > { %v4418_v37 = vpack.c.bf16 %v692_v27, %v692_v27  ;;  %v4426_v51 = vpack.c.bf16 %v700_v28, %v700_v28  ;;  %v695_v55 = vmax.f32 %v679_v46, 0.0  ;;  %v703_v38 = vmax.f32 %v687_v47, 0.0 }
 0x10e   : > { %v811_v39 = vor.u32 %v809_v24, %v808_v29  ;;  %v879_v42 = vor.u32 %v877_v26, %v876_v31  ;;  %v693_v58 = vmax.f32 %v677_v32, 0.0  ;;  %v701_v35 = vmax.f32 %v685_v33, 0.0 }
 0x10f   : > { %v789_v43 = vshrl.u32 %v4418_v37, 16  ;;  %v792_v44 = vshll.u32 %v4418_v37, 16  ;;  %v857_v45 = vshrl.u32 %v4426_v51, 16  ;;  %v860_v48 = vshll.u32 %v4426_v51, 16  ;;  %v964_v37 = vld [vmem:[#allocation2 + $0x5c] sm:$0x1] }
 0x110   : > { %v940_v49 = vsel %vm5276_vm8, %v811_v39, %v939_v54  ;;  %v968_v50 = vsel %vm5276_vm8, %v879_v42, %v967_v36  ;;  %v4421_v52 = vpack.c.bf16 %v695_v55, %v695_v55  ;;  %v4429_v53 = vpack.c.bf16 %v703_v38, %v703_v38  ;;  %v936_v36 = vld [vmem:[#allocation2 + $0x2c] sm:$0x1] }
 0x111   : > { %941 = vst [vmem:[#allocation2 + $0x30] sm:$0xf] %v940_v49  ;;  %969 = vst [vmem:[#allocation2 + $0x60] sm:$0xf] %v968_v50  ;;  %v791_v57 = vrot.slane %v789_v43, 7  ;;  %v859_v34 = vrot.slane %v857_v45, 7  ;;  %v4419_v6 = vpack.c.bf16 %v693_v58, %v693_v58  ;;  %v4427_v8 = vpack.c.bf16 %v701_v35, %v701_v35 }
 0x112   : > { %v814_v61 = vshrl.u32 %v4421_v52, 16  ;;  %v882_v62 = vshrl.u32 %v4429_v53, 16  ;;  %v817_v2 = vshll.u32 %v4421_v52, 16  ;;  %v885_v4 = vshll.u32 %v4429_v53, 16 }
 0x113   : > { %v794_v63 = vor.u32 %v792_v44, %v791_v57  ;;  %v862_v0 = vor.u32 %v860_v48, %v859_v34  ;;  %v812_v7 = vrot.slane %v808_v29, 4  ;;  %v880_v10 = vrot.slane %v876_v31, 4 }
 0x114   : > { %v816_v5 = vrot.slane %v814_v61, 7  ;;  %v884_v3 = vrot.slane %v882_v62, 7  ;;  %v797_v24 = vshrl.u32 %v4419_v6, 16  ;;  %v865_v25 = vshrl.u32 %v4427_v8, 16 }
 0x115   : > { %v933_v11 = vsel %vm5276_vm8, %v794_v63, %v932_v59  ;;  %v961_v12 = vsel %vm5276_vm8, %v862_v0, %v960_v60  ;;  %v800_v29 = vshll.u32 %v4419_v6, 16  ;;  %v868_v32 = vshll.u32 %v4427_v8, 16 }
 0x116   : > { %934 = vst [vmem:[#allocation2 + $0x24] sm:$0xf] %v933_v11  ;;  %962 = vst [vmem:[#allocation2 + $0x54] sm:$0xf] %v961_v12  ;;  %v819_v22 = vor.u32 %v817_v2, %v816_v5  ;;  %v821_v40 = vrot.slane %v816_v5, 4  ;;  %v887_v41 = vor.u32 %v885_v4, %v884_v3  ;;  %v889_v23 = vrot.slane %v884_v3, 4 }
 0x117   : > { %v799_v47 = vrot.slane %v797_v24, 7  ;;  %v867_v31 = vrot.slane %v865_v25, 7  ;;  %v795_v33 = vrot.slane %v791_v57, 4  ;;  %v863_v54 = vrot.slane %v859_v34, 4  ;;  %977 = sbr.rel (%p4187_p7) target bundleno = 288 (0x120), region = 64 }
 0x118   : > { %v820_v26 = vsel %vm5296_vm9, %v812_v7, %v819_v22  ;;  %v944_v27 = vsel %vm5137_vm2, %v821_v40, %v943_v9  ;;  %v888_v28 = vsel %vm5296_vm9, %v880_v10, %v887_v41  ;;  %v972_v46 = vsel %vm5137_vm2, %v889_v23, %v971_v21 }
 0x119   : > { %942 = vst.msk [vmem:[#allocation2 + $0x34] sm:$0xf] %vm915_vm6, %v820_v26  ;;  %945 = vst [vmem:[#allocation2 + $0x38] sm:$0x1] %v944_v27  ;;  %v802_v51 = vor.u32 %v800_v29, %v799_v47  ;;  %v804_v55 = vrot.slane %v799_v47, 4  ;;  %v870_v38 = vor.u32 %v868_v32, %v867_v31  ;;  %v872_v39 = vrot.slane %v867_v31, 4 }
 0x11a   : > { %970 = vst.msk [vmem:[#allocation2 + $0x64] sm:$0xf] %vm915_vm6, %v888_v28  ;;  %973 = vst [vmem:[#allocation2 + $0x68] sm:$0x1] %v972_v46  ;;  %v5034_v48 = vmov (!%p4187_p7), 0  }
 0x11b   : > { %v803_v42 = vsel %vm5296_vm9, %v795_v33, %v802_v51  ;;  %v937_v43 = vsel %vm5137_vm2, %v804_v55, %v936_v36  ;;  %v871_v44 = vsel %vm5296_vm9, %v863_v54, %v870_v38  ;;  %v965_v45 = vsel %vm5137_vm2, %v872_v39, %v964_v37  ;;  %978 = vst.msk [vmem:[#allocation2] sm:$0xf] (!%p4187_p7), %vm915_vm6, %v5034_v48 }
 0x11c   : > { %935 = vst.msk [vmem:[#allocation2 + $0x28] sm:$0xf] %vm915_vm6, %v803_v42  ;;  %938 = vst [vmem:[#allocation2 + $0x2c] sm:$0x1] %v937_v43 }
 0x11d   : > { %963 = vst.msk [vmem:[#allocation2 + $0x58] sm:$0xf] %vm915_vm6, %v871_v44  ;;  %966 = vst [vmem:[#allocation2 + $0x5c] sm:$0x1] %v965_v45 }
 0x11e   : > { %979 = vst.msk [vmem:[#allocation2 + $0x4] sm:$0xf] %vm915_vm6, %v5034_v48 }
 0x11f   : > { %981 = vst.msk [vmem:[#allocation2 + $0x8] sm:$0x1] %vm387_vm0, %v5034_v48 }
 0x120 PF: > { %p4188_p8 = scmp.le.s32.totalorder %s5016_s13, 0 }
 0x121   : > { %v4966_v49 = vld [vmem:[%s6325_s1] sm:$0xff] (!%p4188_p8)   ;;  %v5035_v50 = vmov (!%p4188_p8), 0.0   ;;  %s4189_s11 = sadd.s32 (!%p4188_p8), 4294967280, %s5142_s26  ;;  %vm5036_vm10 = vmmov (!%p4188_p8), 0  }
 0x122   : > { %985 = sbr.rel (%p4188_p8) target bundleno = 524 (0x20c), region = 68  ;;  %4571 = vmatprep.subr.bf16.mxu0 (!%p4188_p8), %v5035_v50  ;;  %4573 = vmatprep.mubr.msk.bf16.mxu0 (!%p4188_p8), %vm5036_vm10, %v5035_v50  ;;  %s987_s14 = sshra.s32 (!%p4188_p8), %s4189_s11, 3  ;;  %v4194_v53 = vld [vmem:[%s6326_s2] ss:$0 sm:$0xff] (!%p4188_p8) }
 0x123   : > { %4572 = vmatpush3.bf16.msra.mxu0 (!%p4188_p8), %v4966_v49  ;;  %s4190_s20 = sshll.u32 (!%p4188_p8), %s987_s14, 2  ;;  %v4195_v34 = vld [vmem:[%s6327_s3] ss:$0 sm:$0xff] (!%p4188_p8) }
 0x124   : > { %s990_s22 = scalar_lea.vmem (!%p4188_p8), %s5164_s12, %s4190_s20  ;;  %v1096_v10 = vld [vmem:[#allocation2] sm:$0xf] (!%p4188_p8) }
 0x125   : > { %v4967_v52 = vld [vmem:[%s990_s22] sm:$0xff] (!%p4188_p8)  }
 0x126   : > { %4574 = vmatmul.mubr.msk.bf16.vlgmr.msra.gmra.mrb[0].mxu0 (!%p4188_p8), %vm520_vm5, %v4967_v52  ;;  %v1100_v21 = vld [vmem:[#allocation2 + $0x8] sm:$0x1] (!%p4188_p8) }
 0x1f9   : > { %v1043_v57 = vpop.f32.mrb[0].mxu0 }
 0x1fa   : > { %v1057_v58 = vmul.f32 %v4194_v53, %v1043_v57  ;;  %v4575_v35 = vpop.f32.mrb[1].mxu0 }
 0x1fb   : > { %v1046_v59 = vpop.f32.mrb[2].mxu0 }
 0x1fc   : > { %v1066_v60 = vadd.f32 %v4195_v34, %v1057_v58  ;;  %v1058_v61 = vmul.f32 %v4194_v53, %v1046_v59  ;;  %v4576_v62 = vpop.f32.mrb[3].mxu0 }
 0x1fe   : > { %v1068_v63 = vmax.f32 %v1066_v60, 0.0  ;;  %v1067_v0 = vadd.f32 %v4195_v34, %v1058_v61 }
 0x200   : > { %v4430_v2 = vpack.c.bf16 %v1068_v63, %v1068_v63  ;;  %v1069_v4 = vmax.f32 %v1067_v0, 0.0 }
 0x202   : > { %v1077_v5 = vshrl.u32 %v4430_v2, 16  ;;  %v4431_v3 = vpack.c.bf16 %v1069_v4, %v1069_v4  ;;  %v1080_v8 = vshll.u32 %v4430_v2, 16 }
 0x204   : > { %v1079_v6 = vrot.slane %v1077_v5, 7  ;;  %v1085_v7 = vshrl.u32 %v4431_v3, 16  ;;  %v1088_v9 = vshll.u32 %v4431_v3, 16 }
 0x206   : > { %v1082_v11 = vor.u32 %v1080_v8, %v1079_v6  ;;  %v1087_v12 = vrot.slane %v1085_v7, 7  ;;  %v1083_v22 = vrot.slane %v1079_v6, 4 }
 0x208   : > { %v1097_v40 = vsel %vm5276_vm8, %v1082_v11, %v1096_v10  ;;  %v1090_v41 = vor.u32 %v1088_v9, %v1087_v12  ;;  %v1092_v23 = vrot.slane %v1087_v12, 4 }
 0x209   : > { %1098 = vst [vmem:[#allocation2] sm:$0xf] %v1097_v40 }
 0x20a   : > { %v1091_v24 = vsel %vm5296_vm9, %v1083_v22, %v1090_v41  ;;  %v1101_v25 = vsel %vm5137_vm2, %v1092_v23, %v1100_v21 }
 0x20b   : > { %1099 = vst.msk [vmem:[#allocation2 + $0x4] sm:$0xf] %vm915_vm6, %v1091_v24  ;;  %1102 = vst [vmem:[#allocation2 + $0x8] sm:$0x1] %v1101_v25 }
 0x20c PF: > { %p4198_p9 = scmp.ne.s32.totalorder %s5016_s13, 1 }
 0x20d   : > { %v5037_v26 = vmov (!%p4198_p9), 0  }
 0x20e   : > { %1106 = sbr.rel (%p4198_p9) target bundleno = 533 (0x215), region = 72  ;;  %1108 = vst.msk [vmem:[#allocation2 + $0x6c] sm:$0xf] (!%p4198_p9), %vm915_vm6, %v5037_v26  ;;  %1109 = vst.msk [vmem:[#allocation2 + $0x70] sm:$0xf] (!%p4198_p9), %vm915_vm6, %v5037_v26 }
 0x20f   : > { %1111 = vst.msk [vmem:[#allocation2 + $0x74] sm:$0x1] (!%p4198_p9), %vm387_vm0, %v5037_v26 }
 0x215 PF: > { %p4199_p10 = scmp.ge.s32.totalorder %s5016_s13, 1 }
 0x216   : > { %v4968_v27 = vld [vmem:[%s6325_s1] sm:$0xff] (!%p4199_p10)   ;;  %v5038_v28 = vmov (!%p4199_p10), 0.0   ;;  %s1116_s30 = sadd.s32 (!%p4199_p10), 128, %s5142_s26  ;;  %vm5039_vm11 = vmmov (!%p4199_p10), 0   ;;  %v1227_v50 = vld [vmem:[#allocation2 + $0x6c] sm:$0xf] (!%p4199_p10) }
 0x217   : > { %1115 = sbr.rel (%p4199_p10) target bundleno = 769 (0x301), region = 76  ;;  %4577 = vmatprep.subr.bf16.mxu0 (!%p4199_p10), %v5038_v28  ;;  %4579 = vmatprep.mubr.msk.bf16.mxu0 (!%p4199_p10), %vm5039_vm11, %v5038_v28  ;;  %s1117_s11 = sshra.s32 (!%p4199_p10), %s1116_s30, 3  ;;  %v4204_v47 = vld [vmem:[%s6326_s2] ss:$0 sm:$0xff] (!%p4199_p10)  ;;  %v1231_v34 = vld [vmem:[#allocation2 + $0x74] sm:$0x1] (!%p4199_p10) }
 0x218   : > { %4578 = vmatpush3.bf16.msra.mxu0 (!%p4199_p10), %v4968_v27  ;;  %s4200_s14 = sshll.u32 (!%p4199_p10), %s1117_s11, 2  ;;  %v4205_v31 = vld [vmem:[%s6327_s3] ss:$0 sm:$0xff] (!%p4199_p10) }
 0x219   : > { %s1120_s20 = scalar_lea.vmem (!%p4199_p10), %s5164_s12, %s4200_s14 }
 0x21a   : > { %v4969_v46 = vld [vmem:[%s1120_s20] sm:$0xff] (!%p4199_p10)  }
 0x21b   : > { %4580 = vmatmul.mubr.msk.bf16.vlgmr.msra.gmra.mrb[0].mxu0 (!%p4199_p10), %vm520_vm5, %v4969_v46 }
 0x2ee   : > { %v1173_v29 = vpop.f32.mrb[0].mxu0 }
 0x2ef   : > { %v1187_v32 = vmul.f32 %v4204_v47, %v1173_v29  ;;  %v4581_v33 = vpop.f32.mrb[1].mxu0 }
 0x2f0   : > { %v1176_v54 = vpop.f32.mrb[2].mxu0 }
 0x2f1   : > { %v1196_v36 = vadd.f32 %v4205_v31, %v1187_v32  ;;  %v1188_v37 = vmul.f32 %v4204_v47, %v1176_v54  ;;  %v4582_v51 = vpop.f32.mrb[3].mxu0 }
 0x2f3   : > { %v1198_v55 = vmax.f32 %v1196_v36, 0.0  ;;  %v1197_v38 = vadd.f32 %v4205_v31, %v1188_v37 }
 0x2f5   : > { %v4432_v39 = vpack.c.bf16 %v1198_v55, %v1198_v55  ;;  %v1199_v42 = vmax.f32 %v1197_v38, 0.0 }
 0x2f7   : > { %v1207_v43 = vshrl.u32 %v4432_v39, 16  ;;  %v4433_v44 = vpack.c.bf16 %v1199_v42, %v1199_v42  ;;  %v1210_v48 = vshll.u32 %v4432_v39, 16 }
 0x2f9   : > { %v1209_v45 = vrot.slane %v1207_v43, 7  ;;  %v1215_v49 = vshrl.u32 %v4433_v44, 16  ;;  %v1218_v57 = vshll.u32 %v4433_v44, 16 }
 0x2fb   : > { %v1212_v52 = vor.u32 %v1210_v48, %v1209_v45  ;;  %v1217_v53 = vrot.slane %v1215_v49, 7  ;;  %v1213_v58 = vrot.slane %v1209_v45, 4 }
 0x2fd   : > { %v1228_v35 = vsel %vm5276_vm8, %v1212_v52, %v1227_v50  ;;  %v1220_v59 = vor.u32 %v1218_v57, %v1217_v53  ;;  %v1222_v60 = vrot.slane %v1217_v53, 4 }
 0x2fe   : > { %1229 = vst [vmem:[#allocation2 + $0x6c] sm:$0xf] %v1228_v35 }
 0x2ff   : > { %v1221_v61 = vsel %vm5296_vm9, %v1213_v58, %v1220_v59  ;;  %v1232_v62 = vsel %vm5137_vm2, %v1222_v60, %v1231_v34 }
 0x300   : > { %1230 = vst.msk [vmem:[#allocation2 + $0x70] sm:$0xf] %vm915_vm6, %v1221_v61  ;;  %1233 = vst [vmem:[#allocation2 + $0x74] sm:$0x1] %v1232_v62 }
 0x301 PF: > { %vm1505_vm12 = vcmask 1041408   ;;  %v4283_v63 = vld [vmem:[%s6328_s4 + $0x8] sm:$0x3]  ;;  %v4208_v56 = vld [vmem:[%s6328_s4 + $0x2] sm:$0x3]  ;;  %vm1480_vm0 = vcmask 31744  }
 0x302   : > { %4897 = vmatprep.subr.msk.bf16.mxu0 %vm1505_vm12, %v4283_v63  ;;  %4893 = vmatprep.subr.msk.bf16.mxu1 %vm1505_vm12, %v4208_v56  ;;  %v2484_v1 = vsel %vm1505_vm12, %v4283_v63, 0  ;;  %v1507_v30 = vsel %vm1505_vm12, %v4208_v56, 0  ;;  %v5428_v0 = vld [vmem:[#allocation2] sm:$0xf]  ;;  %v5430_v2 = vld [vmem:[#allocation2 + $0x4] sm:$0xf] }
 0x303   : > { %4656 = vmatpush3.bf16.msra.mxu0 %v2484_v1  ;;  %4584 = vmatpush3.bf16.msra.mxu1 %v1507_v30  ;;  %v5432_v4 = vld [vmem:[#allocation2 + $0x8] sm:$0x1]  ;;  %vm1259_vm13 = vsmask.f32 3328  ;;  %vm1260_vm14 = vsmask.f32 7440 }
 0x304   : > { %v1263_v5 = vshrl.u32 %v5428_v0, 16  ;;  %v1266_v3 = vshll.u32 %v5428_v0, 16  ;;  %v1272_v6 = vshll.u32 %v5430_v2, 16  ;;  %v1276_v8 = vshrl.u32 %v5430_v2, 16  ;;  %v2217_v7 = vld [vmem:[#allocation2 + $0xc] sm:$0xf]  ;;  %vm5457_vm15 = vmor %vm1259_vm13, %vm1260_vm14 }
 0x305   : > { %v1282_v10 = vshll.u32 %v5432_v4, 16  ;;  %v5439_v11 = vld [vmem:[#allocation2 + $0x10] sm:$0xf]  ;;  %v5441_v12 = vld [vmem:[#allocation2 + $0x14] sm:$0x1]  ;;  %v2242_v24 = vshrl.u32 %v2217_v7, 16 }
 0x306   : > { %v1265_v9 = vrot.slane %v1263_v5, 4  ;;  %v1268_v21 = vrot.slane %v1266_v3, 5  ;;  %v1274_v22 = vrot.slane %v1272_v6, 5  ;;  %v1278_v40 = vrot.slane %v1276_v8, 4  ;;  %v5446_v41 = vld [vmem:[%s6328_s4 + $0xa] sm:$0x3] }
 0x307   : > { %v1284_v23 = vrot.slane %v1282_v10, 5  ;;  %v2245_v25 = vshll.u32 %v2217_v7, 16  ;;  %v2251_v26 = vshll.u32 %v5439_v11, 16  ;;  %4898 = vmatprep.subr.msk.bf16.mxu0 %vm1505_vm12, %v5446_v41  ;;  %v2255_v46 = vshrl.u32 %v5439_v11, 16  ;;  %v5453_v29 = vld [vmem:[#allocation2 + $0xc] sm:$0xf] }
 0x308   : > { %v1269_v27 = vor.u32 %v1268_v21, %v1265_v9  ;;  %v1279_v28 = vor.u32 %v1278_v40, %v1274_v22  ;;  %v2261_v47 = vshll.u32 %v5441_v12, 16  ;;  %v2244_v32 = vrot.slane %v2242_v24, 4  ;;  %v5461_v36 = vld [vmem:[#allocation2 + $0x10] sm:$0xf]  ;;  %v5463_v42 = vld [vmem:[#allocation2 + $0x14] sm:$0x1] }
 0x309   : > { %v2247_v33 = vrot.slane %v2245_v25, 5  ;;  %v2253_v54 = vrot.slane %v2251_v26, 5  ;;  %v2257_v55 = vrot.slane %v2255_v46, 4  ;;  %v1287_v43 = vshrl.u32 %v5453_v29, 16  ;;  %v2220_v58 = vld [vmem:[#allocation2 + $0x18] sm:$0xf] }
 0x30a   : > { %v1270_v37 = vrot.slane %v1269_v27, 4  ;;  %v1280_v51 = vrot.slane %v1279_v28, 4  ;;  %v2263_v39 = vrot.slane %v2261_v47, 5  ;;  %v1290_v44 = vshll.u32 %v5453_v29, 16  ;;  %v5474_v62 = vld [vmem:[#allocation2 + $0x1c] sm:$0xf] }
 0x30b   : > { %v2248_v38 = vor.u32 %v2247_v33, %v2244_v32  ;;  %v2258_v49 = vor.u32 %v2257_v55, %v2253_v54  ;;  %v1296_v50 = vshll.u32 %v5461_v36, 16  ;;  %v1289_v57 = vrot.slane %v1287_v43, 4  ;;  %v5479_v1 = vld [vmem:[#allocation2 + $0x20] sm:$0x1]  ;;  %v5486_v24 = vld [vmem:[#allocation2 + $0x18] sm:$0xf] }
 0x30c   : > { %v1275_v45 = vsel %vm5457_vm15, %v1270_v37, %v1274_v22  ;;  %v1285_v48 = vsel %vm5457_vm15, %v1280_v51, %v1284_v23  ;;  %v1292_v34 = vrot.slane %v1290_v44, 5  ;;  %v1300_v60 = vshrl.u32 %v5461_v36, 16  ;;  %v5491_v46 = vld [vmem:[#allocation2 + $0x1c] sm:$0xf]  ;;  %v5618_v18 = vld [vmem:[#allocation2 + $0x4c] sm:$0xf] }
 0x30d   : > { %v4209_v52 = vcombine.low %v1275_v45, %v1285_v48  ;;  %v2249_v53 = vrot.slane %v2248_v38, 4  ;;  %v2259_v35 = vrot.slane %v2258_v49, 4  ;;  %v1298_v59 = vrot.slane %v1296_v50, 5  ;;  %v5498_v38 = vld [vmem:[#allocation2 + $0x20] sm:$0x1] }
 0x30e   : > { %v1306_v61 = vshll.u32 %v5463_v42, 16  ;;  %v1293_v56 = vor.u32 %v1292_v34, %v1289_v57  ;;  %v1302_v5 = vrot.slane %v1300_v60, 4  ;;  %v2266_v6 = vshrl.u32 %v2220_v58, 16  ;;  %6372 = vst [vmem:[#allocation11_spill] sm:$0xff] %v5498_v38  ;;  %v2223_v49 = vld [vmem:[#allocation2 + $0x24] sm:$0xf] }
 0x30f   : > { %4585 = vmatprep.mubr.msk.bf16.mxu1 %vm1480_vm0, %v4209_v52  ;;  %v2254_v63 = vsel %vm5457_vm15, %v2249_v53, %v2253_v54  ;;  %v2264_v30 = vsel %vm5457_vm15, %v2259_v35, %v2263_v39  ;;  %v2269_v10 = vshll.u32 %v2220_v58, 16  ;;  %v2275_v9 = vshll.u32 %v5474_v62, 16  ;;  %v5506_v34 = vld [vmem:[#allocation2 + $0x28] sm:$0xf]  ;;  %v5648_v13 = vld [vmem:[#allocation2 + $0x5c] sm:$0x1] }
 0x310   : > { %v1308_v3 = vrot.slane %v1306_v61, 5  ;;  %v4284_v8 = vcombine.low %v2254_v63, %v2264_v30  ;;  %v1294_v7 = vrot.slane %v1293_v56, 4  ;;  %v1303_v21 = vor.u32 %v1302_v5, %v1298_v59  ;;  %v5512_v63 = vld [vmem:[#allocation2 + $0x2c] sm:$0x1]  ;;  %6374 = vst [vmem:[#allocation13_spill] sm:$0xff] %v5648_v13 }
 0x311   : > { %v2268_v22 = vrot.slane %v2266_v6, 4  ;;  %v2279_v40 = vshrl.u32 %v5474_v62, 16  ;;  %v2285_v23 = vshll.u32 %v5479_v1, 16  ;;  %v2271_v27 = vrot.slane %v2269_v10, 5  ;;  %v2238_v15 = vld [vmem:[#allocation2 + $0x60] sm:$0xf] }
 0x312   : > { %4657 = vmatprep.mubr.msk.bf16.mxu0 %vm1480_vm0, %v4284_v8  ;;  %v2277_v28 = vrot.slane %v2275_v9, 5  ;;  %v1299_v47 = vsel %vm5457_vm15, %v1294_v7, %v1298_v59  ;;  %v1304_v32 = vrot.slane %v1303_v21, 4  ;;  %v2738_v55 = vsel %vm1505_vm12, %v5446_v41, 0  ;;  %v5517_v7 = vld [vmem:[#allocation2 + $0x24] sm:$0xf] }
 0x313   : > { %v2281_v33 = vrot.slane %v2279_v40, 4  ;;  %v2272_v37 = vor.u32 %v2271_v27, %v2268_v22  ;;  %v2287_v51 = vrot.slane %v2285_v23, 5  ;;  %v1311_v39 = vshrl.u32 %v5486_v24, 16  ;;  %v5519_v40 = vld [vmem:[#allocation2 + $0x28] sm:$0xf] }
 0x314   : > { %v1309_v43 = vsel %vm5457_vm15, %v1304_v32, %v1308_v3  ;;  %v1314_v45 = vshll.u32 %v5486_v24, 16  ;;  %v1320_v48 = vshll.u32 %v5491_v46, 16  ;;  %v1324_v57 = vshrl.u32 %v5491_v46, 16 }
 0x315   : > { %v2282_v44 = vor.u32 %v2281_v33, %v2277_v28  ;;  %v4210_v50 = vcombine.low %v1299_v47, %v1309_v43  ;;  %v2273_v52 = vrot.slane %v2272_v37, 4  ;;  %v1313_v53 = vrot.slane %v1311_v39, 4  ;;  %v5524_v37 = vld [vmem:[#allocation2 + $0x2c] sm:$0x1] }
 0x316   : > { %v1316_v58 = vrot.slane %v1314_v45, 5  ;;  %v1322_v35 = vrot.slane %v1320_v48, 5  ;;  %v1330_v59 = vshll.u32 %v5498_v38, 16  ;;  %v1326_v61 = vrot.slane %v1324_v57, 4 }
 0x317   : > { %v2283_v41 = vrot.slane %v2282_v44, 4  ;;  %4586 = vmatmul.mubr.msk.bf16.vlgmr.msra.gmra.mrb[0].mxu1 %vm1480_vm0, %v4210_v50  ;;  %v2278_v60 = vsel %vm5457_vm15, %v2273_v52, %v2277_v28  ;;  %v2290_v56 = vshrl.u32 %v2223_v49, 16  ;;  %v2293_v30 = vshll.u32 %v2223_v49, 16  ;;  %v2226_v49 = vld [vmem:[#allocation2 + $0x30] sm:$0xf] }
 0x318   : > { %v1317_v3 = vor.u32 %v1316_v58, %v1313_v53  ;;  %v1332_v6 = vrot.slane %v1330_v59, 5  ;;  %v2299_v8 = vshll.u32 %v5506_v34, 16  ;;  %v1327_v9 = vor.u32 %v1326_v61, %v1322_v35 }
 0x319   : > { %v2288_v5 = vsel %vm5457_vm15, %v2283_v41, %v2287_v51  ;;  %v2292_v21 = vrot.slane %v2290_v56, 4  ;;  %v2295_v22 = vrot.slane %v2293_v30, 5  ;;  %v2303_v28 = vshrl.u32 %v5506_v34, 16  ;;  %v5533_v41 = vld [vmem:[#allocation2 + $0x34] sm:$0xf] }
 0x31a   : > { %v4285_v10 = vcombine.low %v2278_v60, %v2288_v5  ;;  %v1318_v23 = vrot.slane %v1317_v3, 4  ;;  %v2301_v27 = vrot.slane %v2299_v8, 5  ;;  %v2309_v47 = vshll.u32 %v5512_v63, 16 }
 0x31b   : > { %v1328_v32 = vrot.slane %v1327_v9, 4  ;;  %v2296_v33 = vor.u32 %v2295_v22, %v2292_v21  ;;  %v1335_v51 = vshrl.u32 %v5517_v7, 16  ;;  %v1338_v39 = vshll.u32 %v5517_v7, 16 }
 0x31c   : > { %4658 = vmatmul.mubr.msk.bf16.vlgmr.msra.gmra.mrb[0].mxu0 %vm1480_vm0, %v4285_v10  ;;  %v1323_v43 = vsel %vm5457_vm15, %v1318_v23, %v1322_v35  ;;  %v2305_v44 = vrot.slane %v2303_v28, 4  ;;  %v2311_v45 = vrot.slane %v2309_v47, 5  ;;  %v1344_v48 = vshll.u32 %v5519_v40, 16  ;;  %v5544_v28 = vld [vmem:[#allocation2 + $0x30] sm:$0xf] }
 0x31d   : > { %4674 = vmatpush3.bf16.msra.mxu0 %v2738_v55  ;;  %v1333_v50 = vsel %vm5457_vm15, %v1328_v32, %v1332_v6  ;;  %v2297_v52 = vrot.slane %v2296_v33, 4  ;;  %v1337_v53 = vrot.slane %v1335_v51, 4  ;;  %v1340_v57 = vrot.slane %v1338_v39, 5  ;;  %v5540_v6 = vld [vmem:[#allocation2 + $0x38] sm:$0x1] }
 0x31e   : > { %v4211_v58 = vcombine.low %v1323_v43, %v1333_v50  ;;  %v2306_v59 = vor.u32 %v2305_v44, %v2301_v27  ;;  %v1346_v60 = vrot.slane %v1344_v48, 5  ;;  %v1348_v55 = vshrl.u32 %v5519_v40, 16  ;;  %v5548_v51 = vld [vmem:[#allocation2 + $0x34] sm:$0xf] }
 0x31f   : > { %v2302_v35 = vsel %vm5457_vm15, %v2297_v52, %v2301_v27  ;;  %v1341_v61 = vor.u32 %v1340_v57, %v1337_v53  ;;  %v1354_v56 = vshll.u32 %v5524_v37, 16  ;;  %v2314_v30 = vshrl.u32 %v2226_v49, 16  ;;  %v2229_v57 = vld [vmem:[#allocation2 + $0x3c] sm:$0xf] }
 0x320   : > { %4589 = vmatprep.mubr.msk.bf16.mxu1 %vm1480_vm0, %v4211_v58  ;;  %v2307_v5 = vrot.slane %v2306_v59, 4  ;;  %v1350_v3 = vrot.slane %v1348_v55, 4  ;;  %v2317_v8 = vshll.u32 %v2226_v49, 16  ;;  %v2323_v10 = vshll.u32 %v5533_v41, 16  ;;  %v5553_v49 = vld [vmem:[#allocation2 + $0x38] sm:$0x1] }
 0x321   : > { %v1342_v9 = vrot.slane %v1341_v61, 4  ;;  %v1356_v21 = vrot.slane %v1354_v56, 5  ;;  %v2316_v22 = vrot.slane %v2314_v30, 4  ;;  %v2327_v23 = vshrl.u32 %v5533_v41, 16 }
 0x322   : > { %v2312_v27 = vsel %vm5457_vm15, %v2307_v5, %v2311_v45  ;;  %v1351_v47 = vor.u32 %v1350_v3, %v1346_v60  ;;  %v2319_v32 = vrot.slane %v2317_v8, 5  ;;  %v2325_v33 = vrot.slane %v2323_v10, 5  ;;  %v5567_v3 = vld [vmem:[#allocation2 + $0x40] sm:$0xf] }
 0x323   : > { %v4286_v39 = vcombine.low %v2302_v35, %v2312_v27  ;;  %v1347_v43 = vsel %vm5457_vm15, %v1342_v9, %v1346_v60  ;;  %v2329_v44 = vrot.slane %v2327_v23, 4  ;;  %v2333_v48 = vshll.u32 %v5540_v6, 16  ;;  %v5563_v35 = vld [vmem:[%s6328_s4] sm:$0x3]  ;;  %v5574_v23 = vld [vmem:[%s6328_s4 + $0xc] sm:$0x3] }
 0x324   : > { %v1352_v50 = vrot.slane %v1351_v47, 4  ;;  %v2320_v52 = vor.u32 %v2319_v32, %v2316_v22  ;;  %v1359_v53 = vshrl.u32 %v5544_v28, 16  ;;  %v1362_v45 = vshll.u32 %v5544_v28, 16  ;;  %4894 = vmatprep.subr.msk.bf16.mxu1 %vm1505_vm12, %v5563_v35  ;;  %4899 = vmatprep.subr.msk.bf16.mxu0 %vm1505_vm12, %v5574_v23 }
 0x325   : > { %4661 = vmatprep.mubr.msk.bf16.mxu0 %vm1480_vm0, %v4286_v39  ;;  %v2330_v58 = vor.u32 %v2329_v44, %v2325_v33  ;;  %v2335_v59 = vrot.slane %v2333_v48, 5  ;;  %v1368_v55 = vshll.u32 %v5548_v51, 16  ;;  %v1372_v60 = vshrl.u32 %v5548_v51, 16  ;;  %v5584_v44 = vld [vmem:[#allocation2 + $0x44] sm:$0x1] }
 0x326   : > { %v1357_v61 = vsel %vm5457_vm15, %v1352_v50, %v1356_v21  ;;  %v2321_v56 = vrot.slane %v2320_v52, 4  ;;  %v1361_v30 = vrot.slane %v1359_v53, 4  ;;  %v1364_v5 = vrot.slane %v1362_v45, 5  ;;  %v5587_v52 = vld [vmem:[#allocation2 + $0x3c] sm:$0xf] }
 0x327   : > { %v4212_v8 = vcombine.low %v1347_v43, %v1357_v61  ;;  %v2331_v10 = vrot.slane %v2330_v58, 4  ;;  %v1370_v9 = vrot.slane %v1368_v55, 5  ;;  %v1374_v22 = vrot.slane %v1372_v60, 4  ;;  %v5589_v55 = vld [vmem:[#allocation2 + $0x40] sm:$0xf] }
 0x328   : > { %v2326_v21 = vsel %vm5457_vm15, %v2321_v56, %v2325_v33  ;;  %v1365_v27 = vor.u32 %v1364_v5, %v1361_v30  ;;  %v1378_v47 = vshll.u32 %v5553_v49, 16  ;;  %v2338_v32 = vshrl.u32 %v2229_v57, 16  ;;  %v5596_v5 = vld [vmem:[#allocation2 + $0x44] sm:$0x1] }
 0x329   : > { %4590 = vmatmul.mubr.msk.bf16.gmra.mrb[4].mxu1 %vm1480_vm0, %v4212_v8  ;;  %v2336_v39 = vsel %vm5457_vm15, %v2331_v10, %v2335_v59  ;;  %v1375_v43 = vor.u32 %v1374_v22, %v1370_v9  ;;  %v2341_v48 = vshll.u32 %v2229_v57, 16  ;;  %v2347_v50 = vshll.u32 %v5567_v3, 16 }
 0x32a   : > { %v4287_v33 = vcombine.low %v2326_v21, %v2336_v39  ;;  %v1366_v53 = vrot.slane %v1365_v27, 4  ;;  %v1380_v45 = vrot.slane %v1378_v47, 5  ;;  %v2340_v58 = vrot.slane %v2338_v32, 4  ;;  %v2232_v32 = vld [vmem:[#allocation2 + $0x48] sm:$0xf] }
 0x32b   : > { %v1376_v60 = vrot.slane %v1375_v43, 4  ;;  %v2343_v61 = vrot.slane %v2341_v48, 5  ;;  %v2349_v56 = vrot.slane %v2347_v50, 5  ;;  %v2351_v30 = vshrl.u32 %v5567_v3, 16  ;;  %v5603_v39 = vld [vmem:[#allocation2 + $0x4c] sm:$0xf] }
 0x32c   : > { %4662 = vmatmul.mubr.msk.bf16.gmra.mrb[4].mxu0 %vm1480_vm0, %v4287_v33  ;;  %v1371_v57 = vsel %vm5457_vm15, %v1366_v53, %v1370_v9  ;;  %v2357_v59 = vshll.u32 %v5584_v44, 16  ;;  %v1383_v8 = vshrl.u32 %v5587_v52, 16  ;;  %v1386_v10 = vshll.u32 %v5587_v52, 16 }
 0x32d   : > { %v1381_v22 = vsel %vm5457_vm15, %v1376_v60, %v1380_v45  ;;  %v2344_v21 = vor.u32 %v2343_v61, %v2340_v58  ;;  %v2353_v27 = vrot.slane %v2351_v30, 4  ;;  %v1392_v47 = vshll.u32 %v5589_v55, 16  ;;  %v5608_v58 = vld [vmem:[#allocation2 + $0x50] sm:$0x1] }
 0x32e   : > { %v4213_v43 = vcombine.low %v1371_v57, %v1381_v22  ;;  %v2359_v9 = vrot.slane %v2357_v59, 5  ;;  %v1385_v48 = vrot.slane %v1383_v8, 4  ;;  %v1388_v50 = vrot.slane %v1386_v10, 5  ;;  %v5613_v10 = vld [vmem:[#allocation2 + $0x48] sm:$0xf] }
 0x32f   : > { %v2345_v33 = vrot.slane %v2344_v21, 4  ;;  %v2354_v53 = vor.u32 %v2353_v27, %v2349_v56  ;;  %v1394_v26 = vrot.slane %v1392_v47, 5  ;;  %v1396_v54 = vshrl.u32 %v5589_v55, 16 }
 0x330   : > { %4593 = vmatprep.mubr.msk.bf16.mxu1 %vm1480_vm0, %v4213_v43  ;;  %v1389_v25 = vor.u32 %v1388_v50, %v1385_v48  ;;  %v1402_v45 = vshll.u32 %v5596_v5, 16  ;;  %v2362_v60 = vshrl.u32 %v2232_v32, 16  ;;  %v2365_v61 = vshll.u32 %v2232_v32, 16 }
 0x331   : > { %v2350_v30 = vsel %vm5457_vm15, %v2345_v33, %v2349_v56  ;;  %v2355_v57 = vrot.slane %v2354_v53, 4  ;;  %v1398_v59 = vrot.slane %v1396_v54, 4  ;;  %v2371_v8 = vshll.u32 %v5603_v39, 16 }
 0x332   : > { %v1390_v22 = vrot.slane %v1389_v25, 4  ;;  %v1404_v21 = vrot.slane %v1402_v45, 5  ;;  %v2364_v27 = vrot.slane %v2362_v60, 4  ;;  %v2367_v47 = vrot.slane %v2365_v61, 5  ;;  %v5623_v25 = vld [vmem:[#allocation2 + $0x50] sm:$0x1] }
 0x333   : > { %v2360_v43 = vsel %vm5457_vm15, %v2355_v57, %v2359_v9  ;;  %v1399_v48 = vor.u32 %v1398_v59, %v1394_v26  ;;  %v2373_v50 = vrot.slane %v2371_v8, 5  ;;  %v2375_v32 = vshrl.u32 %v5603_v39, 16  ;;  %v2235_v57 = vld [vmem:[#allocation2 + $0x54] sm:$0xf] }
 0x334   : > { %v4288_v56 = vcombine.low %v2350_v30, %v2360_v43  ;;  %v1395_v54 = vsel %vm5457_vm15, %v1390_v22, %v1394_v26  ;;  %v2368_v33 = vor.u32 %v2367_v47, %v2364_v27  ;;  %v2381_v53 = vshll.u32 %v5608_v58, 16 }
 0x335   : > { %v1400_v45 = vrot.slane %v1399_v48, 4  ;;  %v2377_v60 = vrot.slane %v2375_v32, 4  ;;  %v1407_v61 = vshrl.u32 %v5613_v10, 16  ;;  %v1410_v9 = vshll.u32 %v5613_v10, 16  ;;  %v5632_v48 = vld [vmem:[#allocation2 + $0x58] sm:$0xf] }
 0x336   : > { %4665 = vmatprep.mubr.msk.bf16.mxu0 %vm1480_vm0, %v4288_v56  ;;  %v2369_v59 = vrot.slane %v2368_v33, 4  ;;  %v2383_v8 = vrot.slane %v2381_v53, 5  ;;  %v1416_v30 = vshll.u32 %v5618_v18, 16  ;;  %v1420_v26 = vshrl.u32 %v5618_v18, 16  ;;  %v5636_v33 = vld [vmem:[#allocation2 + $0x5c] sm:$0x1] }
 0x337   : > { %v1405_v22 = vsel %vm5457_vm15, %v1400_v45, %v1404_v21  ;;  %v2378_v27 = vor.u32 %v2377_v60, %v2373_v50  ;;  %v1409_v47 = vrot.slane %v1407_v61, 4  ;;  %v1412_v43 = vrot.slane %v1410_v9, 5  ;;  %v5638_v53 = vld [vmem:[#allocation2 + $0x54] sm:$0xf]  ;;  %v5641_v45 = vld [vmem:[#allocation2 + $0x58] sm:$0xf] }
 0x338   : > { %v4214_v32 = vcombine.low %v1395_v54, %v1405_v22  ;;  %v2374_v20 = vsel %vm5457_vm15, %v2369_v59, %v2373_v50  ;;  %v1418_v14 = vrot.slane %v1416_v30, 5  ;;  %v1422_v56 = vrot.slane %v1420_v26, 4  ;;  %6373 = vst [vmem:[#allocation12_spill] sm:$0xff] %v5638_v53 }
 0x339   : > { %v2379_v16 = vrot.slane %v2378_v27, 4  ;;  %v1413_v17 = vor.u32 %v1412_v43, %v1409_v47  ;;  %v1426_v19 = vshll.u32 %v5623_v25, 16  ;;  %v2386_v21 = vshrl.u32 %v2235_v57, 16 }
 0x33a   : > { %4594 = vmatmul.mubr.msk.bf16.gmra.mrb[8].mxu1 %vm1480_vm0, %v4214_v32  ;;  %v1423_v60 = vor.u32 %v1422_v56, %v1418_v14  ;;  %v2389_v54 = vshll.u32 %v2235_v57, 16  ;;  %v2395_v61 = vshll.u32 %v5632_v48, 16  ;;  %v2399_v50 = vshrl.u32 %v5632_v48, 16 }
 0x33b   : > { %v2384_v9 = vsel %vm5457_vm15, %v2379_v16, %v2383_v8  ;;  %v1414_v59 = vrot.slane %v1413_v17, 4  ;;  %v1428_v30 = vrot.slane %v1426_v19, 5  ;;  %v2388_v26 = vrot.slane %v2386_v21, 4  ;;  %v5659_v8 = vld [vmem:[#allocation2 + $0x64] sm:$0xf] }
 0x33c   : > { %v4289_v22 = vcombine.low %v2374_v20, %v2384_v9  ;;  %v1424_v27 = vrot.slane %v1423_v60, 4  ;;  %v2391_v47 = vrot.slane %v2389_v54, 5  ;;  %v2397_v43 = vrot.slane %v2395_v61, 5 }
 0x33d   : > { %v1419_v57 = vsel %vm5457_vm15, %v1414_v59, %v1418_v14  ;;  %v2401_v32 = vrot.slane %v2399_v50, 4  ;;  %v2405_v56 = vshll.u32 %v5636_v33, 16  ;;  %v1431_v38 = vshrl.u32 %v5638_v53, 16 }
 0x33e   : > { %4666 = vmatmul.mubr.msk.bf16.gmra.mrb[8].mxu0 %vm1480_vm0, %v4289_v22  ;;  %v1429_v16 = vsel %vm5457_vm15, %v1424_v27, %v1428_v30  ;;  %v2392_v17 = vor.u32 %v2391_v47, %v2388_v26  ;;  %v1434_v19 = vshll.u32 %v5638_v53, 16  ;;  %v1440_v20 = vshll.u32 %v5641_v45, 16 }
 0x33f   : > { %v4215_v21 = vcombine.low %v1419_v57, %v1429_v16  ;;  %v2402_v60 = vor.u32 %v2401_v32, %v2397_v43  ;;  %v2407_v14 = vrot.slane %v2405_v56, 5  ;;  %v1433_v54 = vrot.slane %v1431_v38, 4  ;;  %v5666_v32 = vld [vmem:[#allocation2 + $0x68] sm:$0x1] }
 0x340   : > { %v2393_v61 = vrot.slane %v2392_v17, 4  ;;  %v1436_v50 = vrot.slane %v1434_v19, 5  ;;  %v1442_v9 = vrot.slane %v1440_v20, 5  ;;  %v1444_v59 = vshrl.u32 %v5641_v45, 16 }
 0x341   : > { %4597 = vmatprep.mubr.msk.bf16.mxu1 %vm1480_vm0, %v4215_v21  ;;  %v2403_v22 = vrot.slane %v2402_v60, 4  ;;  %v1450_v30 = vshll.u32 %v5648_v13, 16  ;;  %v2410_v26 = vshrl.u32 %v2238_v15, 16  ;;  %v2413_v27 = vshll.u32 %v2238_v15, 16  ;;  %v2599_v15 = vld [vmem:[#allocation2 + $0xc] sm:$0xe] }
 0x342   : > { %v2398_v47 = vsel %vm5457_vm15, %v2393_v61, %v2397_v43  ;;  %v1437_v53 = vor.u32 %v1436_v50, %v1433_v54  ;;  %v1446_v57 = vrot.slane %v1444_v59, 4  ;;  %v2419_v38 = vshll.u32 %v5659_v8, 16  ;;  %v5674_v43 = vld [vmem:[%s6328_s4 + $0x4] sm:$0x3] }
 0x343   : > { %v2408_v56 = vsel %vm5457_vm15, %v2403_v22, %v2407_v14  ;;  %v1452_v16 = vrot.slane %v1450_v30, 5  ;;  %v2412_v17 = vrot.slane %v2410_v26, 4  ;;  %v2415_v19 = vrot.slane %v2413_v27, 5 }
 0x344   : > { %v4290_v20 = vcombine.low %v2398_v47, %v2408_v56  ;;  %v1438_v21 = vrot.slane %v1437_v53, 4  ;;  %v1447_v60 = vor.u32 %v1446_v57, %v1442_v9  ;;  %v2421_v13 = vrot.slane %v2419_v38, 5  ;;  %v2600_v56 = vld [vmem:[#allocation2 + $0x18] sm:$0xe] }
 0x345   : > { %v2416_v54 = vor.u32 %v2415_v19, %v2412_v17  ;;  %v2423_v61 = vshrl.u32 %v5659_v8, 16  ;;  %v2429_v50 = vshll.u32 %v5666_v32, 16  ;;  %v1671_v14 = vsel %vm1505_vm12, %v5563_v35, 0  ;;  %v2601_v17 = vld [vmem:[#allocation2 + $0x24] sm:$0xe] }
 0x346   : > { %4669 = vmatprep.mubr.msk.bf16.mxu0 %vm1480_vm0, %v4290_v20  ;;  %v1443_v53 = vsel %vm5457_vm15, %v1438_v21, %v1442_v9  ;;  %v1448_v59 = vrot.slane %v1447_v60, 4  ;;  %4602 = vmatpush3.bf16.msra.mxu1 %v1671_v14  ;;  %vm1794_vm1 = vcmask 1042432   ;;  %vm1795_vm2 = vcmask 1046532  }
 0x347   : > { %v2417_v22 = vrot.slane %v2416_v54, 4  ;;  %v2425_v30 = vrot.slane %v2423_v61, 4  ;;  %vm5683_vm3 = vmor %vm1794_vm1, %vm1795_vm2  ;;  %v4300_v27 = vrot.slane %v2599_v15, 9  ;;  %4895 = vmatprep.subr.msk.bf16.mxu1 %vm1505_vm12, %v5674_v43  ;;  %v4225_v9 = vcombine.low %v5428_v0, %v5430_v2 }
 0x348   : > { %v1453_v35 = vsel %vm5457_vm15, %v1448_v59, %v1452_v16  ;;  %v6377_v47 = vrot.slane %v5439_v11, 5  ;;  %v4226_v38 = vcombine.low %v5453_v29, %v5461_v36  ;;  %v2431_v21 = vrot.slane %v2429_v50, 5 }
 0x349   : > { %v4216_v19 = vcombine.low %v1443_v53, %v1453_v35  ;;  %v2426_v20 = vor.u32 %v2425_v30, %v2421_v13  ;;  %v6379_v16 = vrot.slane %v5474_v62, 5  ;;  %v2643_v0 = vrot.slane %v5479_v1, 5 }
 0x34a   : > { %v2635_v57 = vrot.slane %v6377_v47, 4  ;;  %v6378_v60 = vmov %v6377_v47  ;;  %v6380_v61 = vrot.slane %v5441_v12, 5  ;;  %v2422_v50 = vsel %vm5457_vm15, %v2417_v22, %v2421_v13 }
 0x34b   : > { %v2634_v15 = vsel %vm5683_vm3, %v4300_v27, %v6378_v60  ;;  %v2642_v54 = vrot.slane %v6379_v16, 4  ;;  %4598 = vmatmul.mubr.msk.bf16.gmra.mrb[12].mxu1 %vm1480_vm0, %v4216_v19  ;;  %v2427_v14 = vrot.slane %v2426_v20, 4  ;;  %v4301_v53 = vrot.slane %v2600_v56, 9  ;;  %v2602_v27 = vld [vmem:[#allocation2 + $0x30] sm:$0xe] }
 0x34c   : > { %v2637_v29 = vsel %vm5683_vm3, %v2635_v57, %v6380_v61  ;;  %4603 = vmatprep.mubr.msk.bf16.mxu1 %vm1480_vm0, %v4225_v9  ;;  %v4302_v59 = vrot.slane %v2601_v17, 9  ;;  %v2647_v30 = vrot.slane %v5506_v34, 5  ;;  %v2650_v12 = vrot.slane %v5512_v63, 5  ;;  %v2603_v19 = vld [vmem:[#allocation2 + $0x3c] sm:$0xe] }
 0x34d   : > { %v4309_v11 = vcombine.low %v2634_v15, %v2637_v29  ;;  %v2432_v1 = vsel %vm5457_vm15, %v2427_v14, %v2431_v21  ;;  %v2654_v35 = vrot.slane %v5533_v41, 5  ;;  %v6381_v13 = vmov %v6379_v16  ;;  %v2604_v20 = vld [vmem:[#allocation2 + $0x48] sm:$0xe]  ;;  %v2605_v61 = vld [vmem:[#allocation2 + $0x54] sm:$0xe] }
 0x34e   : > { %v4291_v47 = vcombine.low %v2422_v50, %v2432_v1  ;;  %v2649_v57 = vrot.slane %v2647_v30, 4  ;;  %v2641_v22 = vsel %vm5683_vm3, %v4301_v53, %v6381_v13  ;;  %v2644_v9 = vsel %vm5683_vm3, %v2642_v54, %v2643_v0  ;;  %v5762_v53 = vld [vmem:[%s6328_s4 + $0x6] sm:$0x3] }
 0x34f   : > { %v4227_v34 = vcombine.low %v5486_v24, %v5491_v46  ;;  %v2661_v56 = vrot.slane %v5567_v3, 5  ;;  %v2648_v63 = vsel %vm5683_vm3, %v4302_v59, %v2647_v30  ;;  %v4303_v41 = vrot.slane %v2602_v27, 9 }
 0x350   : > { %4670 = vmatmul.mubr.msk.bf16.gmra.mrb[12].mxu0 %vm1480_vm0, %v4291_v47  ;;  %v2656_v17 = vrot.slane %v2654_v35, 4  ;;  %v2657_v62 = vrot.slane %v5540_v6, 5  ;;  %v2651_v21 = vsel %vm5683_vm3, %v2649_v57, %v2650_v12  ;;  %v4304_v60 = vrot.slane %v2603_v19, 9  ;;  %v5774_v57 = vld [vmem:[#allocation2 + $0x60] sm:$0xe] }
 0x351   : > { %4675 = vmatprep.mubr.msk.bf16.mxu0 %vm1480_vm0, %v4309_v11  ;;  %v2663_v15 = vrot.slane %v2661_v56, 4  ;;  %v2664_v24 = vrot.slane %v5584_v44, 5  ;;  %v1802_v3 = vrot.slane %v5432_v4, 5  ;;  %v2668_v16 = vrot.slane %v5603_v39, 5 }
 0x352   : > { %v1806_v54 = vrot.slane %v5461_v36, 5  ;;  %v4310_v0 = vcombine.low %v2641_v22, %v2644_v9  ;;  %v2937_v6 = vsel %vm1505_vm12, %v5574_v23, 0  ;;  %v2675_v29 = vrot.slane %v5632_v48, 5 }
 0x353   : > { %4604 = vmatmul.mubr.msk.bf16.vlgmr.msra.gmra.mrb[0].mxu1 %vm1480_vm0, %v4226_v38  ;;  %v4311_v50 = vcombine.low %v2648_v63, %v2651_v21  ;;  %v5744_v44 = vsel %vm5683_vm3, %v4303_v41, %v2654_v35  ;;  %v5748_v39 = vsel %vm5683_vm3, %v2656_v17, %v2657_v62  ;;  %v4305_v36 = vrot.slane %v2604_v20, 9  ;;  %v1771_v38 = vld [vmem:[#allocation2 + $0xc] sm:$0xe]  ;;  %v1774_v62 = vld [vmem:[#allocation2 + $0x30] sm:$0xe] }
 0x354   : > { %4607 = vmatprep.mubr.msk.bf16.mxu1 %vm1480_vm0, %v4227_v34  ;;  %v5752_v14 = vsel %vm5683_vm3, %v4304_v60, %v2661_v56  ;;  %v5756_v23 = vsel %vm5683_vm3, %v2663_v15, %v2664_v24  ;;  %v2670_v48 = vrot.slane %v2668_v16, 4  ;;  %v2671_v11 = vrot.slane %v5608_v58, 5  ;;  %v1773_v34 = vld [vmem:[#allocation2 + $0x24] sm:$0xe] }
 0x355   : > { %v4306_v59 = vrot.slane %v2605_v61, 9  ;;  %v2677_v30 = vrot.slane %v2675_v29, 4  ;;  %v2678_v1 = vrot.slane %v5636_v33, 5  ;;  %v1904_v12 = vsel %vm1505_vm12, %v5674_v43, 0  ;;  %v5779_v33 = vld [vmem:[%s6328_s4 + $0xe] sm:$0x3] }
 0x356   : > { %v1809_v27 = vrot.slane %v5463_v42, 5  ;;  %v4228_v35 = vcombine.low %v5517_v7, %v5519_v40  ;;  %v4229_v58 = vcombine.low %v5544_v28, %v5548_v51  ;;  %v4230_v47 = vcombine.low %v5587_v52, %v5589_v55  ;;  %4620 = vmatpush3.bf16.msra.mxu1 %v1904_v12  ;;  %v5786_v28 = vld [vmem:[#allocation2] sm:$0xe] }
 0x357   : > { %v4312_v42 = vcombine.low %v5744_v44, %v5748_v39  ;;  %v4231_v7 = vcombine.low %v5613_v10, %v5618_v18  ;;  %v4242_v43 = vrot.slane %v1771_v38, 9  ;;  %v1808_v19 = vrot.slane %v1806_v54, 4  ;;  %4896 = vmatprep.subr.msk.bf16.mxu1 %vm1505_vm12, %v5762_v53 }
 0x358   : > { %4676 = vmatmul.mubr.msk.bf16.vlgmr.msra.gmra.mrb[0].mxu0 %vm1480_vm0, %v4310_v0  ;;  %v4313_v13 = vcombine.low %v5752_v14, %v5756_v23  ;;  %v5795_v22 = vsel %vm5683_vm3, %v4305_v36, %v2668_v16  ;;  %v5799_v10 = vsel %vm5683_vm3, %v2670_v48, %v2671_v11  ;;  %v2682_v9 = vrot.slane %v5659_v8, 5  ;;  %v1775_v0 = vld [vmem:[#allocation2 + $0x3c] sm:$0xe]  ;;  %v1777_v11 = vld [vmem:[#allocation2 + $0x54] sm:$0xe] }
 0x359   : > { %4692 = vmatpush3.bf16.msra.mxu0 %v2937_v6  ;;  %4679 = vmatprep.mubr.msk.bf16.mxu0 %vm1480_vm0, %v4311_v50  ;;  %v5804_v56 = vsel %vm5683_vm3, %v4306_v59, %v2675_v29  ;;  %v5808_v63 = vsel %vm5683_vm3, %v2677_v30, %v2678_v1  ;;  %v1799_v41 = vrot.slane %v5430_v2, 5  ;;  %v5815_v17 = vsel %vm5683_vm3, %v4242_v43, %v1806_v54  ;;  %v1776_v50 = vld [vmem:[#allocation2 + $0x48] sm:$0xe] }
 0x35a   : > { %4900 = vmatprep.subr.msk.bf16.mxu0 %vm1505_vm12, %v5779_v33  ;;  %v4307_v20 = vrot.slane %v5774_v57, 9  ;;  %v2685_v21 = vrot.slane %v5666_v32, 5  ;;  %v4241_v60 = vrot.slane %v5786_v28, 9  ;;  %v5823_v15 = vsel %vm5683_vm3, %v1808_v19, %v1809_v27 }
 0x35b   : > { %4608 = vmatmul.mubr.msk.bf16.gmra.mrb[4].mxu1 %vm1480_vm0, %v4228_v35  ;;  %v4314_v2 = vcombine.low %v5795_v22, %v5799_v10  ;;  %v4251_v24 = vcombine.low %v5815_v17, %v5823_v15  ;;  %v4244_v16 = vrot.slane %v1773_v34, 9  ;;  %v1820_v54 = vrot.slane %v5519_v40, 5  ;;  %v1772_v34 = vld [vmem:[#allocation2 + $0x18] sm:$0xe]  ;;  %v3055_v17 = vld [vmem:[#allocation2 + $0x24] sm:$0xf] }
 0x35c   : > { %4611 = vmatprep.mubr.msk.bf16.mxu1 %vm1480_vm0, %v4229_v58  ;;  %v4315_v32 = vcombine.low %v5804_v56, %v5808_v63  ;;  %v2684_v6 = vrot.slane %v2682_v9, 4  ;;  %v1823_v61 = vrot.slane %v5524_v37, 5  ;;  %v4245_v29 = vrot.slane %v1774_v62, 9  ;;  %v5943_v15 = vld [vmem:[#allocation2 + $0x28] sm:$0xf] }
 0x35d   : > { %v1801_v44 = vrot.slane %v1799_v41, 4  ;;  %v5838_v39 = vsel %vm5683_vm3, %v4244_v16, %v1820_v54  ;;  %v1822_v36 = vrot.slane %v1820_v54, 4  ;;  %v1827_v38 = vrot.slane %v5548_v51, 5 }
 0x35e   : > { %v1830_v40 = vrot.slane %v5553_v49, 5  ;;  %v4246_v14 = vrot.slane %v1775_v0, 9  ;;  %v1834_v23 = vrot.slane %v5589_v55, 5  ;;  %v1837_v48 = vrot.slane %v5596_v5, 5  ;;  %v6384_v0 = vld [vmem:[#allocation11_spill] sm:$0xff] }
 0x35f   : > { %v5847_v37 = vsel %vm5683_vm3, %v1822_v36, %v1823_v61  ;;  %v5851_v59 = vsel %vm5683_vm3, %v4245_v29, %v1827_v38  ;;  %v1829_v30 = vrot.slane %v1827_v38, 4  ;;  %v4247_v51 = vrot.slane %v1776_v50, 9  ;;  %v4980_v29 = vld [vmem:[#allocation2 + $0x30] sm:$0xff]   ;;  %v5934_v50 = vld [vmem:[#allocation2 + $0x1c] sm:$0xf] }
 0x360   : > { %4680 = vmatmul.mubr.msk.bf16.gmra.mrb[4].mxu0 %vm1480_vm0, %v4312_v42  ;;  %v4253_v49 = vcombine.low %v5838_v39, %v5847_v37  ;;  %v5858_v5 = vsel %vm5683_vm3, %v4246_v14, %v1834_v23  ;;  %v1836_v1 = vrot.slane %v1834_v23, 4  ;;  %v1841_v12 = vrot.slane %v5618_v18, 5  ;;  %v5967_v37 = vld [vmem:[#allocation2 + $0x34] sm:$0xf] }
 0x361   : > { %4683 = vmatprep.mubr.msk.bf16.mxu0 %vm1480_vm0, %v4313_v13  ;;  %v5863_v27 = vsel %vm5683_vm3, %v1829_v30, %v1830_v40  ;;  %v1844_v35 = vrot.slane %v5623_v25, 5  ;;  %v4248_v58 = vrot.slane %v1777_v11, 9  ;;  %v1848_v57 = vrot.slane %v5641_v45, 5 }
 0x362   : > { %v4254_v42 = vcombine.low %v5851_v59, %v5863_v27  ;;  %v5875_v18 = vsel %vm5683_vm3, %v1836_v1, %v1837_v48  ;;  %v5879_v28 = vsel %vm5683_vm3, %v4247_v51, %v1841_v12  ;;  %v1843_v25 = vrot.slane %v1841_v12, 4  ;;  %v4981_v51 = vld [vmem:[#allocation2 + $0x3c] sm:$0xff]  }
 0x363   : > { %4612 = vmatmul.mubr.msk.bf16.gmra.mrb[8].mxu1 %vm1480_vm0, %v4230_v47  ;;  %v4255_v43 = vcombine.low %v5858_v5, %v5875_v18  ;;  %v5886_v52 = vsel %vm5683_vm3, %v4248_v58, %v1848_v57  ;;  %v1850_v55 = vrot.slane %v1848_v57, 4  ;;  %v6382_v47 = vld [vmem:[#allocation13_spill] sm:$0xff]  ;;  %v1800_v13 = vsel %vm5683_vm3, %v4241_v60, %v1799_v41  ;;  %v6383_v41 = vld [vmem:[#allocation12_spill] sm:$0xff] }
 0x364   : > { %4615 = vmatprep.mubr.msk.bf16.mxu1 %vm1480_vm0, %v4231_v7  ;;  %v1851_v19 = vrot.slane %v6382_v47, 5  ;;  %v1803_v22 = vsel %vm5683_vm3, %v1801_v44, %v1802_v3  ;;  %v1813_v7 = vrot.slane %v5491_v46, 5  ;;  %v5898_v10 = vsel %vm5683_vm3, %v1843_v25, %v1844_v35  ;;  %v4982_v35 = vld [vmem:[#allocation2 + $0x48] sm:$0xff]   ;;  %v5963_v58 = vld [vmem:[#allocation2 + $0x20] sm:$0x1] }
 0x365   : > { %v4256_v56 = vcombine.low %v5879_v28, %v5898_v10  ;;  %v4232_v4 = vcombine.low %v6383_v41, %v5641_v45  ;;  %v2683_v46 = vsel %vm5683_vm3, %v4307_v20, %v2682_v9  ;;  %v4250_v62 = vcombine.low %v1800_v13, %v1803_v22  ;;  %v3058_v25 = vld [vmem:[#allocation2 + $0x30] sm:$0xf] }
 0x366   : > { %v5904_v63 = vsel %vm5683_vm3, %v1850_v55, %v1851_v19  ;;  %v2686_v60 = vsel %vm5683_vm3, %v2684_v6, %v2685_v21  ;;  %v4243_v16 = vrot.slane %v1772_v34, 9  ;;  %v1815_v54 = vrot.slane %v1813_v7, 4  ;;  %v4979_v6 = vld [vmem:[#allocation2 + $0x24] sm:$0xff]   ;;  %v4983_v34 = vld [vmem:[#allocation2 + $0x54] sm:$0xff]  }
 0x367   : > { %v4257_v3 = vcombine.low %v5886_v52, %v5904_v63  ;;  %v1816_v45 = vrot.slane %v6384_v0, 5  ;;  %v4316_v61 = vcombine.low %v2683_v46, %v2686_v60  ;;  %v2102_v21 = vsel %vm1505_vm12, %v5762_v53, 0  ;;  %v5941_v53 = vld [vmem:[%s6328_s4 + $0x10] sm:$0x3]  ;;  %v3061_v60 = vld [vmem:[#allocation2 + $0x3c] sm:$0xf] }
 0x368   : > { %4684 = vmatmul.mubr.msk.bf16.gmra.mrb[8].mxu0 %vm1480_vm0, %v4314_v2  ;;  %v4978_v2 = vld [vmem:[#allocation2 + $0x18] sm:$0xff]   ;;  %v1814_v8 = vsel %vm5683_vm3, %v4243_v16, %v1813_v7  ;;  %v3319_v38 = vsel %vm1505_vm12, %v5779_v33, 0  ;;  %v3090_v40 = vshrl.u32 %v5934_v50, 16  ;;  %v3101_v33 = vshrl.u32 %v3055_v17, 16  ;;  %v4984_v16 = vld [vmem:[#allocation2 + $0x60] sm:$0xff]  }
 0x369   : > { %4687 = vmatprep.mubr.msk.bf16.mxu0 %vm1480_vm0, %v4315_v32  ;;  %v1817_v9 = vsel %vm5683_vm3, %v1815_v54, %v1816_v45  ;;  %v3052_v32 = vld [vmem:[#allocation2 + $0x18] sm:$0xf]  ;;  %v3104_v48 = vshll.u32 %v3055_v17, 16  ;;  %v3110_v11 = vshll.u32 %v5943_v15, 16  ;;  %v3114_v30 = vshrl.u32 %v5943_v15, 16 }
 0x36a   : > { %v4252_v20 = vcombine.low %v1814_v8, %v1817_v9  ;;  %v3077_v44 = vshrl.u32 %v3052_v32, 16  ;;  %v3080_v36 = vshll.u32 %v3052_v32, 16  ;;  %v3092_v12 = vrot.slane %v3090_v40, 4  ;;  %v5983_v54 = vld [vmem:[#allocation2 + $0x38] sm:$0x1] }
 0x36b   : > { %4616 = vmatmul.mubr.msk.bf16.gmra.mrb[12].mxu1 %vm1480_vm0, %v4232_v4  ;;  %v3103_v55 = vrot.slane %v3101_v33, 4  ;;  %v3106_v47 = vrot.slane %v3104_v48, 5  ;;  %v5965_v19 = vrot.slane %v3110_v11, 5  ;;  %v3116_v39 = vrot.slane %v3114_v30, 4  ;;  %v5985_v0 = vld [vmem:[#allocation2 + $0x40] sm:$0xf] }
 0x36c   : > { %4621 = vmatprep.mubr.msk.bf16.mxu1 %vm1480_vm0, %v4250_v62  ;;  %v3079_v14 = vrot.slane %v3077_v44, 4  ;;  %v3082_v23 = vrot.slane %v3080_v36, 5  ;;  %v3096_v27 = vshll.u32 %v5963_v58, 16  ;;  %v3128_v13 = vshll.u32 %v3058_v25, 16  ;;  %v3064_v9 = vld [vmem:[#allocation2 + $0x48] sm:$0xf] }
 0x36d   : > { %v3134_v22 = vshll.u32 %v5967_v37, 16  ;;  %v3138_v7 = vshrl.u32 %v5967_v37, 16  ;;  %v3107_v4 = vor.u32 %v3106_v47, %v3103_v55  ;;  %v3117_v46 = vor.u32 %v3116_v39, %v5965_v19  ;;  %v4985_v47 = vld [vmem:[#allocation2 + $0x6c] sm:$0xff]  }
 0x36e   : > { %v3083_v57 = vor.u32 %v3082_v23, %v3079_v14  ;;  %v3130_v8 = vrot.slane %v3128_v13, 5  ;;  %v3149_v18 = vshrl.u32 %v3061_v60, 16  ;;  %v3173_v44 = vshrl.u32 %v3064_v9, 16 }
 0x36f   : > { %v3140_v5 = vrot.slane %v3138_v7, 4  ;;  %v3118_v28 = vrot.slane %v3117_v46, 4  ;;  %v3176_v36 = vshll.u32 %v3064_v9, 16  ;;  %v4987_v7 = vld [vmem:[#allocation2 + $0x18] sm:$0xff]   ;;  %vm4041_vm4 = vcmask 125952  }
 0x370   : > { %4688 = vmatmul.mubr.msk.bf16.gmra.mrb[12].mxu0 %vm1480_vm0, %v4316_v61  ;;  %v3084_v41 = vrot.slane %v3083_v57, 4  ;;  %v3098_v61 = vrot.slane %v3096_v27, 5  ;;  %v3151_v48 = vrot.slane %v3149_v18, 4  ;;  %v6021_v57 = vld [vmem:[#allocation2 + $0x50] sm:$0x1] }
 0x371   : > { %4693 = vmatprep.mubr.msk.bf16.mxu0 %vm1480_vm0, %v4978_v2  ;;  %v3178_v55 = vrot.slane %v3176_v36, 5  ;;  %v3192_v46 = vshll.u32 %v6021_v57, 16 }
 0x373   : > { %4622 = vmatmul.mubr.msk.bf16.vlgmr.msra.gmra.mrb[0].mxu1 %vm1480_vm0, %v4251_v24  ;;  %v3086_v24 = vshll.u32 %v5934_v50, 16  ;;  %v3194_v36 = vrot.slane %v3192_v46, 5 }
 0x374   : > { %4625 = vmatprep.mubr.msk.bf16.mxu1 %vm1480_vm0, %v4252_v20  ;;  %4638 = vmatpush3.bf16.msra.mxu1 %v2102_v21  ;;  %v5991_v20 = vrot.slane %v3134_v22, 5  ;;  %v5993_v21 = vld [vmem:[#allocation2 + $0x4c] sm:$0xf]  ;;  %v6027_v22 = vld [vmem:[#allocation2 + $0x58] sm:$0xf] }
 0x375   : > { %v5961_v1 = vrot.slane %v3086_v24, 5  ;;  %v3144_v24 = vshll.u32 %v5983_v54, 16  ;;  %v3182_v40 = vshll.u32 %v5993_v21, 16  ;;  %v3186_v14 = vshrl.u32 %v5993_v21, 16 }
 0x376   : > { %v3141_v33 = vor.u32 %v3140_v5, %v5991_v20  ;;  %v3210_v9 = vshrl.u32 %v6027_v22, 16 }
 0x377   : > { %v3093_v59 = vor.u32 %v3092_v12, %v5961_v1  ;;  %v3089_v32 = vsel %vm5457_vm15, %v3084_v41, %v5961_v1  ;;  %v6013_v1 = vld [vmem:[#allocation2 + $0x44] sm:$0x1]  ;;  %v3146_v39 = vrot.slane %v3144_v24, 5  ;;  %v3188_v27 = vrot.slane %v3186_v14, 4 }
 0x378   : > { %4694 = vmatmul.mubr.msk.bf16.vlgmr.msra.gmra.mrb[0].mxu0 %vm1480_vm0, %v4979_v6  ;;  %v3108_v6 = vrot.slane %v3107_v4, 4  ;;  %v3142_v52 = vrot.slane %v3141_v33, 4  ;;  %v3573_v14 = vsel %vm1505_vm12, %v5941_v53, 0  ;;  %v6049_v33 = vld [vmem:[#allocation2 + $0x5c] sm:$0x1] }
 0x379   : > { %4710 = vmatpush3.bf16.msra.mxu0 %v3319_v38  ;;  %4697 = vmatprep.mubr.msk.bf16.mxu0 %vm1480_vm0, %v4980_v29  ;;  %v3094_v45 = vrot.slane %v3093_v59, 4  ;;  %v3162_v29 = vshrl.u32 %v5985_v0, 16  ;;  %v4986_v38 = vld [vmem:[#allocation2 + $0xc] sm:$0xff]   ;;  %v6024_v59 = vrot.slane %v3182_v40, 5  ;;  %v3212_v40 = vrot.slane %v3210_v9, 4 }
 0x37a   : > { %4901 = vmatprep.subr.msk.bf16.mxu0 %vm1505_vm12, %v5941_v53  ;;  %v3113_v30 = vsel %vm5457_vm15, %v3108_v6, %v5965_v19  ;;  %v3147_v18 = vsel %vm5457_vm15, %v3142_v52, %v3146_v39  ;;  %v6061_v39 = vld [vmem:[#allocation2 + $0x68] sm:$0x1] }
 0x37b   : > { %4626 = vmatmul.mubr.msk.bf16.gmra.mrb[4].mxu1 %vm1480_vm0, %v4253_v49  ;;  %v5969_v49 = vld [vmem:[#allocation2 + $0x2c] sm:$0x1]  ;;  %v3099_v17 = vsel %vm5457_vm15, %v3094_v45, %v3098_v61  ;;  %v4988_v45 = vld [vmem:[#allocation2 + $0x24] sm:$0xff]   ;;  %v3189_v61 = vor.u32 %v3188_v27, %v6024_v59  ;;  %v4990_v27 = vld [vmem:[#allocation2 + $0x3c] sm:$0xff]  }
 0x37c   : > { %4629 = vmatprep.mubr.msk.bf16.mxu1 %vm1480_vm0, %v4254_v42  ;;  %v3125_v42 = vshrl.u32 %v3058_v25, 16  ;;  %v3120_v62 = vshll.u32 %v5969_v49, 16  ;;  %v3175_v25 = vrot.slane %v3173_v44, 4  ;;  %v4343_v19 = vcombine.low %v3089_v32, %v3099_v17 }
 0x37d   : > { %v3478_v31 = vrot.slane %v5969_v49, 5 }
 0x37e   : > { %v3127_v2 = vrot.slane %v3125_v42, 4  ;;  %v3122_v10 = vrot.slane %v3120_v62, 5  ;;  %v3067_v42 = vld [vmem:[#allocation2 + $0x54] sm:$0xf]  ;;  %v3179_v4 = vor.u32 %v3178_v55, %v3175_v25  ;;  %v6051_v25 = vld [vmem:[#allocation2 + $0x70] sm:$0xf] }
 0x37f   : > { %v3197_v62 = vshrl.u32 %v3067_v42, 16  ;;  %v4989_v55 = vld [vmem:[#allocation2 + $0x30] sm:$0xff]  }
 0x380   : > { %4698 = vmatmul.mubr.msk.bf16.gmra.mrb[4].mxu0 %vm1480_vm0, %v4981_v51  ;;  %v3131_v23 = vor.u32 %v3130_v8, %v3127_v2  ;;  %v3123_v51 = vsel %vm5457_vm15, %v3118_v28, %v3122_v10  ;;  %v3200_v2 = vshll.u32 %v3067_v42, 16  ;;  %v3206_v8 = vshll.u32 %v6027_v22, 16 }
 0x381   : > { %4701 = vmatprep.mubr.msk.bf16.mxu0 %vm1480_vm0, %v4982_v35  ;;  %v3164_v35 = vrot.slane %v3162_v29, 4  ;;  %v3180_v44 = vrot.slane %v3179_v4, 4 }
 0x382   : > { %v3132_v13 = vrot.slane %v3131_v23, 4  ;;  %v3202_v17 = vrot.slane %v3200_v2, 5  ;;  %v3208_v24 = vrot.slane %v3206_v8, 5 }
 0x383   : > { %4630 = vmatmul.mubr.msk.bf16.gmra.mrb[8].mxu1 %vm1480_vm0, %v4255_v43  ;;  %v3152_v43 = vshll.u32 %v3061_v60, 16  ;;  %v3070_v60 = vld [vmem:[#allocation2 + $0x60] sm:$0xf]  ;;  %v3185_v53 = vsel %vm5457_vm15, %v3180_v44, %v6024_v59  ;;  %v3258_v59 = vshrl.u32 %v6051_v25, 16 }
 0x384   : > { %4633 = vmatprep.mubr.msk.bf16.mxu1 %vm1480_vm0, %v4256_v56  ;;  %v3158_v56 = vshll.u32 %v5985_v0, 16  ;;  %v3137_v5 = vsel %vm5457_vm15, %v3132_v13, %v5991_v20  ;;  %v3221_v6 = vshrl.u32 %v3070_v60, 16  ;;  %v3224_v28 = vshll.u32 %v3070_v60, 16 }
 0x385   : > { %v3154_v11 = vrot.slane %v3152_v43, 5  ;;  %v3190_v20 = vrot.slane %v3189_v61, 4  ;;  %v4345_v23 = vcombine.low %v3137_v5, %v3147_v18  ;;  %v3213_v52 = vor.u32 %v3212_v40, %v3208_v24 }
 0x386   : > { %v6019_v12 = vrot.slane %v3158_v56, 5  ;;  %v3260_v5 = vrot.slane %v3258_v59, 4  ;;  %v3468_v40 = vrot.slane %v5934_v50, 5 }
 0x387   : > { %v3155_v63 = vor.u32 %v3154_v11, %v3151_v48  ;;  %v3073_v48 = vld [vmem:[#allocation2 + $0x6c] sm:$0xf]  ;;  %v3223_v11 = vrot.slane %v3221_v6, 4  ;;  %v3195_v42 = vsel %vm5457_vm15, %v3190_v20, %v3194_v36  ;;  %v6073_v6 = vld [vmem:[#allocation2 + $0x74] sm:$0x1] }
 0x388   : > { %4702 = vmatmul.mubr.msk.bf16.gmra.mrb[8].mxu0 %vm1480_vm0, %v4983_v34  ;;  %v4344_v34 = vcombine.low %v3113_v30, %v3123_v51  ;;  %v3165_v41 = vor.u32 %v3164_v35, %v6019_v12  ;;  %v3226_v30 = vrot.slane %v3224_v28, 5  ;;  %v4991_v28 = vld [vmem:[#allocation2 + $0x48] sm:$0xff]  }
 0x389   : > { %4705 = vmatprep.mubr.msk.bf16.mxu0 %vm1480_vm0, %v4984_v16  ;;  %v6031_v16 = vld [vmem:[#allocation2 + $0x64] sm:$0xf]  ;;  %v3156_v43 = vrot.slane %v3155_v63, 4  ;;  %v3216_v63 = vshll.u32 %v6049_v33, 16 }
 0x38a   : > { %v3230_v10 = vshll.u32 %v6031_v16, 16  ;;  %v3234_v56 = vshrl.u32 %v6031_v16, 16  ;;  %v3166_v29 = vrot.slane %v3165_v41, 4  ;;  %v3227_v41 = vor.u32 %v3226_v30, %v3223_v11 }
 0x38b   : > { %4634 = vmatmul.mubr.msk.bf16.gmra.mrb[12].mxu1 %vm1480_vm0, %v4257_v3  ;;  %v3168_v3 = vshll.u32 %v6013_v1, 16  ;;  %v3218_v61 = vrot.slane %v3216_v63, 5 }
 0x38c   : > { %4639 = vmatprep.mubr.msk.bf16.mxu1 %vm1480_vm0, %v4986_v38  ;;  %v3199_v38 = vrot.slane %v3197_v62, 4  ;;  %v3232_v51 = vrot.slane %v3230_v10, 5  ;;  %v3236_v35 = vrot.slane %v3234_v56, 4  ;;  %v4347_v62 = vcombine.low %v3185_v53, %v3195_v42  ;;  %v4992_v56 = vld [vmem:[#allocation2 + $0x54] sm:$0xff]  }
 0x38d   : > { %v3170_v32 = vrot.slane %v3168_v3, 5  ;;  %v3248_v3 = vshll.u32 %v3073_v48, 16  ;;  %v3228_v18 = vrot.slane %v3227_v41, 4  ;;  %v3475_v53 = vrot.slane %v5943_v15, 5 }
 0x38e   : > { %v3203_v13 = vor.u32 %v3202_v17, %v3199_v38  ;;  %v3237_v4 = vor.u32 %v3236_v35, %v3232_v51  ;;  %v3264_v38 = vshll.u32 %v6073_v6, 16  ;;  %v3485_v41 = vrot.slane %v5983_v54, 5 }
 0x38f   : > { %v3250_v8 = vrot.slane %v3248_v3, 5  ;;  %v3233_v20 = vsel %vm5457_vm15, %v3228_v18, %v3232_v51  ;;  %v4993_v51 = vld [vmem:[#allocation2 + $0x60] sm:$0xff]   ;;  %v3496_v54 = vrot.slane %v5993_v21, 5 }
 0x390   : > { %4706 = vmatmul.mubr.msk.bf16.gmra.mrb[12].mxu0 %vm1480_vm0, %v4985_v47  ;;  %v3161_v47 = vsel %vm5457_vm15, %v3156_v43, %v6019_v12  ;;  %v3245_v12 = vshrl.u32 %v3073_v48, 16  ;;  %v3204_v60 = vrot.slane %v3203_v13, 4  ;;  %v3238_v43 = vrot.slane %v3237_v4, 4 }
 0x391   : > { %4711 = vmatprep.mubr.msk.bf16.mxu0 %vm1480_vm0, %v4343_v19  ;;  %v3171_v19 = vsel %vm5457_vm15, %v3166_v29, %v3170_v32  ;;  %v3266_v30 = vrot.slane %v3264_v38, 5  ;;  %v3482_v13 = vrot.slane %v5967_v37, 5  ;;  %v3498_v18 = vrot.slane %v3496_v54, 4 }
 0x392   : > { %v4346_v46 = vcombine.low %v3161_v47, %v3171_v19  ;;  %v3247_v2 = vrot.slane %v3245_v12, 4  ;;  %v3209_v10 = vsel %vm5457_vm15, %v3204_v60, %v3208_v24  ;;  %v3434_v24 = vld [vmem:[#allocation2 + $0x18] sm:$0xe]  ;;  %v3471_v47 = vrot.slane %v5963_v58, 5  ;;  %v3435_v58 = vld [vmem:[#allocation2 + $0x24] sm:$0xe] }
 0x393   : > { %4640 = vmatmul.mubr.msk.bf16.vlgmr.msra.gmra.mrb[0].mxu1 %vm1480_vm0, %v4987_v7  ;;  %v3254_v7 = vshll.u32 %v6051_v25, 16  ;;  %v4359_v35 = vrot.slane %v3434_v24, 9  ;;  %v4360_v3 = vrot.slane %v3435_v58, 9  ;;  %v3484_v15 = vrot.slane %v3482_v13, 4  ;;  %v3438_v60 = vld [vmem:[#allocation2 + $0x48] sm:$0xe] }
 0x394   : > { %4643 = vmatprep.mubr.msk.bf16.mxu1 %vm1480_vm0, %v4988_v45  ;;  %v3214_v45 = vrot.slane %v3213_v52, 4  ;;  %v3251_v44 = vor.u32 %v3250_v8, %v3247_v2  ;;  %v3436_v52 = vld [vmem:[#allocation2 + $0x30] sm:$0xe] }
 0x395   : > { %v3256_v9 = vrot.slane %v3254_v7, 5  ;;  %v3477_v7 = vrot.slane %v3475_v53, 4  ;;  %v4361_v59 = vrot.slane %v3436_v52, 9  ;;  %v3476_v37 = vsel %vm5683_vm3, %v4360_v3, %v3475_v53 }
 0x396   : > { %v3219_v29 = vsel %vm5457_vm15, %v3214_v45, %v3218_v61  ;;  %v3252_v48 = vrot.slane %v3251_v44, 4  ;;  %v3486_v49 = vsel %vm5683_vm3, %v3484_v15, %v3485_v41 }
 0x397   : > { %v3261_v36 = vor.u32 %v3260_v5, %v3256_v9  ;;  %v3479_v4 = vsel %vm5683_vm3, %v3477_v7, %v3478_v31  ;;  %v4363_v5 = vrot.slane %v3438_v60, 9 }
 0x398   : > { %4712 = vmatmul.mubr.msk.bf16.vlgmr.msra.gmra.mrb[0].mxu0 %vm1480_vm0, %v4344_v34  ;;  %v3240_v34 = vshll.u32 %v6061_v39, 16  ;;  %v3257_v50 = vsel %vm5457_vm15, %v3252_v48, %v3256_v9  ;;  %v4369_v45 = vcombine.low %v3476_v37, %v3479_v4  ;;  %v3492_v9 = vrot.slane %v6013_v1, 5  ;;  %v3441_v48 = vld [vmem:[#allocation2 + $0x6c] sm:$0xe]  ;;  %v6168_v4 = vld [vmem:[%s6329_s5] ss:$0 sm:$0xff] }
 0x399   : > { %4728 = vmatpush3.bf16.msra.mxu0 %v3573_v14  ;;  %4715 = vmatprep.mubr.msk.bf16.mxu0 %vm1480_vm0, %v4345_v23  ;;  %v4348_v14 = vcombine.low %v3209_v10, %v3219_v29  ;;  %v3262_v11 = vrot.slane %v3261_v36, 4  ;;  %v3439_v10 = vld [vmem:[#allocation2 + $0x54] sm:$0xe] }
 0x39a   : > { %v3242_v32 = vrot.slane %v3240_v34, 5  ;;  %v3489_v34 = vrot.slane %v5985_v0, 5  ;;  %v3499_v0 = vrot.slane %v6021_v57, 5  ;;  %v3510_v57 = vrot.slane %v6031_v16, 5 }
 0x39b   : > { %4644 = vmatmul.mubr.msk.bf16.gmra.mrb[4].mxu1 %vm1480_vm0, %v4989_v55  ;;  %v3470_v55 = vrot.slane %v3468_v40, 4  ;;  %v3267_v19 = vsel %vm5457_vm15, %v3262_v11, %v3266_v30  ;;  %v4364_v36 = vrot.slane %v3439_v10, 9  ;;  %v4366_v30 = vrot.slane %v3441_v48, 9 }
 0x39c   : > { %4647 = vmatprep.mubr.msk.bf16.mxu1 %vm1480_vm0, %v4990_v27  ;;  %v3243_v17 = vsel %vm5457_vm15, %v3238_v43, %v3242_v32  ;;  %v3469_v27 = vsel %vm5683_vm3, %v4359_v35, %v3468_v40  ;;  %v4350_v63 = vcombine.low %v3257_v50, %v3267_v19  ;;  %v3491_v8 = vrot.slane %v3489_v34, 4  ;;  %v3758_v50 = vld [vmem:[%s6331_s7] sm:$0x3] }
 0x39d   : > { %v4349_v23 = vcombine.low %v3233_v20, %v3243_v17  ;;  %v3472_v42 = vsel %vm5683_vm3, %v3470_v55, %v3471_v47  ;;  %v3503_v32 = vrot.slane %v6027_v22, 5  ;;  %v3500_v1 = vsel %vm5683_vm3, %v3498_v18, %v3499_v0  ;;  %4902 = vmatprep.subr.msk.bf16.mxu1 %vm1505_vm12, %v3758_v50 }
 0x39e   : > { %v4368_v12 = vcombine.low %v3469_v27, %v3472_v42  ;;  %v3493_v21 = vsel %vm5683_vm3, %v3491_v8, %v3492_v9  ;;  %v3506_v20 = vrot.slane %v6049_v33, 5  ;;  %v3512_v40 = vrot.slane %v3510_v57, 4 }
 0x39f   : > { %v3505_v38 = vrot.slane %v3503_v32, 4  ;;  %v3513_v22 = vrot.slane %v6061_v39, 5  ;;  %v3504_v24 = vsel %vm5683_vm3, %v4364_v36, %v3503_v32  ;;  %v3520_v55 = vrot.slane %v6073_v6, 5 }
 0x3a0   : > { %4716 = vmatmul.mubr.msk.bf16.gmra.mrb[4].mxu0 %vm1480_vm0, %v4346_v46  ;;  %v3483_v46 = vsel %vm5683_vm3, %v4361_v59, %v3482_v13  ;;  %v3784_v6 = vsel %vm1505_vm12, %v3758_v50, 0 }
 0x3a1   : > { %4719 = vmatprep.mubr.msk.bf16.mxu0 %vm1480_vm0, %v4347_v62  ;;  %v3437_v62 = vld [vmem:[#allocation2 + $0x3c] sm:$0xe]  ;;  %v4370_v61 = vcombine.low %v3483_v46, %v3486_v49  ;;  %v3507_v16 = vsel %vm5683_vm3, %v3505_v38, %v3506_v20  ;;  %v3514_v33 = vsel %vm5683_vm3, %v3512_v40, %v3513_v22  ;;  %4746 = vmatpush3.bf16.msra.mxu1 %v3784_v6  ;;  %v6173_v49 = vld [vmem:[%s6330_s6] ss:$0 sm:$0xff] }
 0x3a2   : > { %v4362_v2 = vrot.slane %v3437_v62, 9  ;;  %v4373_v39 = vcombine.low %v3504_v24, %v3507_v16 }
 0x3a3   : > { %4648 = vmatmul.mubr.msk.bf16.gmra.mrb[8].mxu1 %vm1480_vm0, %v4991_v28  ;;  %v3497_v28 = vsel %vm5683_vm3, %v4363_v5, %v3496_v54 }
 0x3a4   : > { %4651 = vmatprep.mubr.msk.bf16.mxu1 %vm1480_vm0, %v4992_v56  ;;  %v3490_v43 = vsel %vm5683_vm3, %v4362_v2, %v3489_v34  ;;  %v3440_v56 = vld [vmem:[#allocation2 + $0x60] sm:$0xe]  ;;  %v4372_v44 = vcombine.low %v3497_v28, %v3500_v1 }
 0x3a5   : > { %v4371_v29 = vcombine.low %v3490_v43, %v3493_v21  ;;  %v4365_v17 = vrot.slane %v3440_v56, 9 }
 0x3a8   : > { %4720 = vmatmul.mubr.msk.bf16.gmra.mrb[8].mxu0 %vm1480_vm0, %v4348_v14  ;;  %v3517_v14 = vrot.slane %v6051_v25, 5 }
 0x3a9   : > { %4723 = vmatprep.mubr.msk.bf16.mxu0 %vm1480_vm0, %v4349_v23  ;;  %v3511_v23 = vsel %vm5683_vm3, %v4365_v17, %v3510_v57 }
 0x3aa   : > { %v4374_v11 = vcombine.low %v3511_v23, %v3514_v33  ;;  %v3519_v35 = vrot.slane %v3517_v14, 4  ;;  %v3518_v25 = vsel %vm5683_vm3, %v4366_v30, %v3517_v14 }
 0x3ab   : > { %4652 = vmatmul.mubr.msk.bf16.gmra.mrb[12].mxu1 %vm1480_vm0, %v4993_v51 }
 0x3ac   : > { %v3521_v47 = vsel %vm5683_vm3, %v3519_v35, %v3520_v55 }
 0x3ad   : > { %v4375_v51 = vcombine.low %v3518_v25, %v3521_v47 }
 0x3b0   : > { %4724 = vmatmul.mubr.msk.bf16.gmra.mrb[12].mxu0 %vm1480_vm0, %v4350_v63 }
 0x3b1   : > { %4729 = vmatprep.mubr.msk.bf16.mxu0 %vm1480_vm0, %v4368_v12 }
 0x3b8   : > { %4730 = vmatmul.mubr.msk.bf16.vlgmr.msra.gmra.mrb[0].mxu0 %vm1480_vm0, %v4369_v45 }
 0x3b9   : > { %4733 = vmatprep.mubr.msk.bf16.mxu0 %vm1480_vm0, %v4370_v61 }
 0x3c0   : > { %4734 = vmatmul.mubr.msk.bf16.gmra.mrb[4].mxu0 %vm1480_vm0, %v4371_v29 }
 0x3c1   : > { %4737 = vmatprep.mubr.msk.bf16.mxu0 %vm1480_vm0, %v4372_v44 }
 0x3c8   : > { %4738 = vmatmul.mubr.msk.bf16.gmra.mrb[8].mxu0 %vm1480_vm0, %v4373_v39 }
 0x3c9   : > { %4741 = vmatprep.mubr.msk.bf16.mxu0 %vm1480_vm0, %v4374_v11 }
 0x3d0   : > { %4742 = vmatmul.mubr.msk.bf16.gmra.mrb[12].mxu0 %vm1480_vm0, %v4375_v51 }
 0x466   : > { %v4641_v19 = vpop.f32.mrb[0].mxu1 }
 0x467   : > { %v2138_v53 = vpop.f32.mrb[1].mxu1 }
 0x468   : > { %v4642_v27 = vpop.f32.mrb[2].mxu1 }
 0x469   : > { %v2141_v42 = vpop.f32.mrb[3].mxu1 }
 0x46e   : > { %v4645_v58 = vpop.f32.mrb[4].mxu1 }
 0x46f   : > { %v2154_v13 = vpop.f32.mrb[5].mxu1 }
 0x470   : > { %v4646_v26 = vpop.f32.mrb[6].mxu1 }
 0x471   : > { %v2157_v52 = vpop.f32.mrb[7].mxu1 }
 0x476   : > { %v4649_v63 = vpop.f32.mrb[8].mxu1 }
 0x477   : > { %v2170_v12 = vpop.f32.mrb[9].mxu1 }
 0x478   : > { %v4650_v3 = vpop.f32.mrb[10].mxu1 }
 0x479   : > { %v2173_v7 = vpop.f32.mrb[11].mxu1 }
 0x47e   : > { %v6157_v31 = vpop.f32.mrb[12].mxu1 }
 0x47f   : > { %v6159_v59 = vpop.f32.mrb[13].mxu1 }
 0x480   : > { %v6161_v15 = vpop.f32.mrb[14].mxu1 }
 0x481   : > { %v6163_v41 = vpop.f32.mrb[15].mxu1 }
 0x48b   : > { %v4731_v37 = vpop.f32.mrb[0].mxu0 }
 0x48c   : > { %v4765_v34 = vadd.f32 %v4731_v37, %v4641_v19  ;;  %v3609_v46 = vpop.f32.mrb[1].mxu0 }
 0x48d   : > { %v4766_v62 = vadd.f32 %v3609_v46, %v2138_v53  ;;  %v4732_v54 = vpop.f32.mrb[2].mxu0 }
 0x48e   : > { %v3697_v60 = vmul.f32 %v4765_v34, %v6168_v4  ;;  %v4767_v45 = vadd.f32 %v4732_v54, %v4642_v27  ;;  %v3612_v61 = vpop.f32.mrb[3].mxu0 }
 0x48f   : > { %v3695_v2 = vmul.f32 %v4766_v62, %v6168_v4  ;;  %v4768_v8 = vadd.f32 %v3612_v61, %v2141_v42 }
 0x490   : > { %v3720_v9 = vadd.f32 %v6173_v49, %v3697_v60  ;;  %v3698_v5 = vmul.f32 %v4767_v45, %v6168_v4 }
 0x491   : > { %v3718_v18 = vadd.f32 %v6173_v49, %v3695_v2  ;;  %v3696_v0 = vmul.f32 %v4768_v8, %v6168_v4 }
 0x492   : > { %v3721_v43 = vadd.f32 %v6173_v49, %v3698_v5  ;;  %v3736_v28 = vmax.f32 %v3720_v9, 0.0 }
 0x493   : > { %v3719_v21 = vadd.f32 %v6173_v49, %v3696_v0  ;;  %v4735_v32 = vpop.f32.mrb[4].mxu0  ;;  %v3734_v56 = vmax.f32 %v3718_v18, 0.0 }
 0x494   : > { %v3737_v1 = vmax.f32 %v3721_v43, 0.0  ;;  %v4769_v10 = vadd.f32 %v4735_v32, %v4645_v58  ;;  %v3625_v57 = vpop.f32.mrb[5].mxu0 }
 0x495   : > { %v3735_v29 = vmax.f32 %v3719_v21, 0.0  ;;  %v4770_v44 = vadd.f32 %v3625_v57, %v2154_v13  ;;  %v4736_v36 = vpop.f32.mrb[6].mxu0 }
 0x496   : > { %v3751_v38 = vpack.c.bf16 %v3737_v1, %v3736_v28  ;;  %v3701_v20 = vmul.f32 %v4769_v10, %v6168_v4  ;;  %v4771_v17 = vadd.f32 %v4736_v36, %v4646_v26  ;;  %v3628_v40 = vpop.f32.mrb[7].mxu0 }
 0x497   : > { %v3750_v22 = vpack.c.bf16 %v3735_v29, %v3734_v56  ;;  %v3699_v24 = vmul.f32 %v4770_v44, %v6168_v4  ;;  %v4772_v16 = vadd.f32 %v3628_v40, %v2157_v52  ;;  %v6385_v40 = vld [vmem:[#allocation5_spill] sm:$0xff] }
 0x498   : > { %v3724_v14 = vadd.f32 %v6173_v49, %v3701_v20  ;;  %v3702_v23 = vmul.f32 %v4771_v17, %v6168_v4 }
 0x499   : > { %v3722_v33 = vadd.f32 %v6173_v49, %v3699_v24  ;;  %v3700_v48 = vmul.f32 %v4772_v16, %v6168_v4  ;;  %4747 = vmatprep.mubr.msk.bf16.mxu1 %vm1480_vm0, %v3750_v22  ;;  %v3931_v22 = vunpack.c.l.bf16 %v6385_v40 }
 0x49a   : > { %v3725_v39 = vadd.f32 %v6173_v49, %v3702_v23  ;;  %4748 = vmatmul.mubr.msk.bf16.vlgmr.msra.gmra.mrb[16].mxu1 %vm1480_vm0, %v3751_v38  ;;  %v3740_v35 = vmax.f32 %v3724_v14, 0.0  ;;  %v6386_v14 = vld [vmem:[#allocation3_spill] sm:$0xff] }
 0x49b   : > { %v3723_v11 = vadd.f32 %v6173_v49, %v3700_v48  ;;  %v4739_v30 = vpop.f32.mrb[8].mxu0  ;;  %v3738_v51 = vmax.f32 %v3722_v33, 0.0  ;;  %v3929_v23 = vunpack.c.l.bf16 %v6386_v14 }
 0x49c   : > { %v3741_v55 = vmax.f32 %v3725_v39, 0.0  ;;  %v4773_v25 = vadd.f32 %v4739_v30, %v4649_v63  ;;  %v3641_v47 = vpop.f32.mrb[9].mxu0 }
 0x49d   : > { %v3739_v50 = vmax.f32 %v3723_v11, 0.0  ;;  %v4774_v6 = vadd.f32 %v3641_v47, %v2170_v12  ;;  %v4740_v19 = vpop.f32.mrb[10].mxu0  ;;  %v3932_v11 = vunpack.c.h.bf16 %v6385_v40  ;;  %v6390_v40 = vld [vmem:[#allocation4_spill] sm:$0xff] }
 0x49e   : > { %v3753_v53 = vpack.c.bf16 %v3741_v55, %v3740_v35  ;;  %v3705_v27 = vmul.f32 %v4773_v25, %v6168_v4  ;;  %v4775_v42 = vadd.f32 %v4740_v19, %v4650_v3  ;;  %v3644_v58 = vpop.f32.mrb[11].mxu0  ;;  %v3930_v25 = vunpack.c.h.bf16 %v6386_v14 }
 0x49f   : > { %v3752_v13 = vpack.c.bf16 %v3739_v50, %v3738_v51  ;;  %v3703_v26 = vmul.f32 %v4774_v6, %v6168_v4  ;;  %v4776_v52 = vadd.f32 %v3644_v58, %v2173_v7 }
 0x4a0   : > { %v3728_v37 = vadd.f32 %v6173_v49, %v3705_v27  ;;  %v3706_v34 = vmul.f32 %v4775_v42, %v6168_v4 }
 0x4a1   : > { %v3726_v63 = vadd.f32 %v6173_v49, %v3703_v26  ;;  %v3704_v46 = vmul.f32 %v4776_v52, %v6168_v4  ;;  %4751 = vmatprep.mubr.msk.bf16.mxu1 %vm1480_vm0, %v3752_v13 }
 0x4a2   : > { %v3729_v12 = vadd.f32 %v6173_v49, %v3706_v34  ;;  %4752 = vmatmul.mubr.msk.bf16.gmra.mrb[20].mxu1 %vm1480_vm0, %v3753_v53  ;;  %v3744_v54 = vmax.f32 %v3728_v37, 0.0  ;;  %v6387_v37 = vld [vmem:[#allocation9_spill] sm:$0xff] }
 0x4a3   : > { %v3727_v3 = vadd.f32 %v6173_v49, %v3704_v46  ;;  %v4743_v62 = vpop.f32.mrb[12].mxu0  ;;  %v3742_v61 = vmax.f32 %v3726_v63, 0.0  ;;  %v3935_v34 = vunpack.c.l.bf16 %v6387_v37 }
 0x4a4   : > { %v3745_v60 = vmax.f32 %v3729_v12, 0.0  ;;  %v4777_v7 = vadd.f32 %v4743_v62, %v6157_v31  ;;  %v3657_v45 = vpop.f32.mrb[13].mxu0  ;;  %v6388_v62 = vld [vmem:[#allocation7_spill] sm:$0xff] }
 0x4a5   : > { %v3743_v2 = vmax.f32 %v3727_v3, 0.0  ;;  %v4778_v8 = vadd.f32 %v3657_v45, %v6159_v59  ;;  %v4744_v9 = vpop.f32.mrb[14].mxu0 }
 0x4a6   : > { %v3755_v5 = vpack.c.bf16 %v3745_v60, %v3744_v54  ;;  %v3709_v18 = vmul.f32 %v4777_v7, %v6168_v4  ;;  %v4779_v0 = vadd.f32 %v4744_v9, %v6161_v15  ;;  %v3660_v43 = vpop.f32.mrb[15].mxu0  ;;  %v3933_v54 = vunpack.c.l.bf16 %v6388_v62 }
 0x4a7   : > { %v3754_v21 = vpack.c.bf16 %v3743_v2, %v3742_v61  ;;  %v3707_v32 = vmul.f32 %v4778_v8, %v6168_v4  ;;  %v4780_v28 = vadd.f32 %v3660_v43, %v6163_v41  ;;  %v3936_v2 = vunpack.c.h.bf16 %v6387_v37 }
 0x4a8   : > { %v3732_v1 = vadd.f32 %v6173_v49, %v3709_v18  ;;  %v3710_v31 = vmul.f32 %v4779_v0, %v6168_v4  ;;  %v3934_v0 = vunpack.c.h.bf16 %v6388_v62 }
 0x4a9   : > { %v3730_v10 = vadd.f32 %v6173_v49, %v3707_v32  ;;  %v3708_v59 = vmul.f32 %v4780_v28, %v6168_v4  ;;  %4755 = vmatprep.mubr.msk.bf16.mxu1 %vm1480_vm0, %v3754_v21  ;;  %v6222_v4 = vld [vmem:[%s6332_s8] ss:$0 sm:$0xff] }
 0x4aa   : > { %v3733_v57 = vadd.f32 %v6173_v49, %v3710_v31  ;;  %4756 = vmatmul.mubr.msk.bf16.gmra.mrb[24].mxu1 %vm1480_vm0, %v3755_v5  ;;  %v3748_v56 = vmax.f32 %v3732_v1, 0.0 }
 0x4ab   : > { %v3731_v15 = vadd.f32 %v6173_v49, %v3708_v59  ;;  %v3746_v44 = vmax.f32 %v3730_v10, 0.0  ;;  %v6227_v49 = vld [vmem:[%s6333_s9] ss:$0 sm:$0xff] }
 0x4ac   : > { %v3749_v29 = vmax.f32 %v3733_v57, 0.0 }
 0x4ad   : > { %v3747_v41 = vmax.f32 %v3731_v15, 0.0 }
 0x4ae   : > { %v3757_v36 = vpack.c.bf16 %v3749_v29, %v3748_v56 }
 0x4af   : > { %v3756_v38 = vpack.c.bf16 %v3747_v41, %v3746_v44  ;;  %v6389_v44 = vld [vmem:[#allocation6_spill] sm:$0xff] }
 0x4b0   : > { %v3939_v41 = vunpack.c.l.bf16 %v6389_v44 }
 0x4b1   : > { %4759 = vmatprep.mubr.msk.bf16.mxu1 %vm1480_vm0, %v3756_v38 }
 0x4b2   : > { %4760 = vmatmul.mubr.msk.bf16.gmra.mrb[28].mxu1 %vm1480_vm0, %v3757_v36 }
 0x56d   : > { %v4749_v20 = vpop.f32.mrb[16].mxu1 }
 0x56e   : > { %v3892_v17 = vmul.f32 %v4749_v20, %v6222_v4  ;;  %v3820_v24 = vpop.f32.mrb[17].mxu1 }
 0x56f   : > { %v3890_v16 = vmul.f32 %v6222_v4, %v3820_v24  ;;  %v4750_v33 = vpop.f32.mrb[18].mxu1 }
 0x570   : > { %v3915_v48 = vadd.f32 %v6227_v49, %v3892_v17  ;;  %v3893_v39 = vmul.f32 %v4750_v33, %v6222_v4  ;;  %v3823_v30 = vpop.f32.mrb[19].mxu1  ;;  %v3940_v33 = vunpack.c.h.bf16 %v6389_v44 }
 0x571   : > { %v3913_v35 = vadd.f32 %v6227_v49, %v3890_v16  ;;  %v3891_v55 = vmul.f32 %v6222_v4, %v3823_v30 }
 0x572   : > { %v3947_v47 = vadd.f32 %v3931_v22, %v3915_v48  ;;  %v3916_v51 = vadd.f32 %v6227_v49, %v3893_v39  ;;  %v3937_v22 = vunpack.c.l.bf16 %v6390_v40 }
 0x573   : > { %v3945_v50 = vadd.f32 %v3929_v23, %v3913_v35  ;;  %v3914_v6 = vadd.f32 %v6227_v49, %v3891_v55  ;;  %v3938_v35 = vunpack.c.h.bf16 %v6390_v40 }
 0x574   : > { %v3963_v19 = vmax.f32 %v3947_v47, 0.0  ;;  %v3948_v53 = vadd.f32 %v3932_v11, %v3916_v51 }
 0x575   : > { %v3961_v27 = vmax.f32 %v3945_v50, 0.0  ;;  %v3946_v42 = vadd.f32 %v3930_v25, %v3914_v6  ;;  %v4753_v58 = vpop.f32.mrb[20].mxu1 }
 0x576   : > { %v4436_v13 = vpack.c.bf16 %v3963_v19, %v3963_v19  ;;  %v3964_v26 = vmax.f32 %v3948_v53, 0.0  ;;  %v3896_v52 = vmul.f32 %v4753_v58, %v6222_v4  ;;  %v3836_v63 = vpop.f32.mrb[21].mxu1 }
 0x577   : > { %v4434_v46 = vpack.c.bf16 %v3961_v27, %v3961_v27  ;;  %v3962_v12 = vmax.f32 %v3946_v42, 0.0  ;;  %v3894_v3 = vmul.f32 %v6222_v4, %v3836_v63  ;;  %v4754_v60 = vpop.f32.mrb[22].mxu1 }
 0x578   : > { %4044 = vst.msk [vmem:[%s5169_s21 + $0x8] sm:$0xf] %vm4041_vm4, %v4436_v13  ;;  %v4437_v7 = vpack.c.bf16 %v3964_v26, %v3964_v26  ;;  %v3919_v45 = vadd.f32 %v6227_v49, %v3896_v52  ;;  %v3897_v61 = vmul.f32 %v4754_v60, %v6222_v4  ;;  %v3839_v8 = vpop.f32.mrb[23].mxu1  ;;  %v6391_v26 = vld [vmem:[#allocation10_spill] sm:$0xff] }
 0x579   : > { %4042 = vst.msk [vmem:[%s5169_s21] sm:$0xf] %vm4041_vm4, %v4434_v46  ;;  %v4435_v9 = vpack.c.bf16 %v3962_v12, %v3962_v12  ;;  %v3917_v5 = vadd.f32 %v6227_v49, %v3894_v3  ;;  %v3895_v18 = vmul.f32 %v6222_v4, %v3839_v8  ;;  %v3943_v52 = vunpack.c.l.bf16 %v6391_v26  ;;  %v6392_v12 = vld [vmem:[#allocation8_spill] sm:$0xff] }
 0x57a   : > { %4045 = vst.msk [vmem:[%s5169_s21 + $0xc] sm:$0xf] %vm4041_vm4, %v4437_v7  ;;  %v3951_v43 = vadd.f32 %v3935_v34, %v3919_v45  ;;  %v3920_v21 = vadd.f32 %v6227_v49, %v3897_v61  ;;  %v3941_v3 = vunpack.c.l.bf16 %v6392_v12  ;;  %v3944_v45 = vunpack.c.h.bf16 %v6391_v26 }
 0x57b   : > { %4043 = vst.msk [vmem:[%s5169_s21 + $0x4] sm:$0xf] %vm4041_vm4, %v4435_v9  ;;  %v3949_v32 = vadd.f32 %v3933_v54, %v3917_v5  ;;  %v3918_v28 = vadd.f32 %v6227_v49, %v3895_v18  ;;  %v3942_v5 = vunpack.c.h.bf16 %v6392_v12 }
 0x57c   : > { %v3967_v1 = vmax.f32 %v3951_v43, 0.0  ;;  %v3952_v31 = vadd.f32 %v3936_v2, %v3920_v21 }
 0x57d   : > { %v3965_v10 = vmax.f32 %v3949_v32, 0.0  ;;  %v3950_v59 = vadd.f32 %v3934_v0, %v3918_v28  ;;  %v4757_v57 = vpop.f32.mrb[24].mxu1 }
 0x57e   : > { %v4440_v15 = vpack.c.bf16 %v3967_v1, %v3967_v1  ;;  %v3968_v56 = vmax.f32 %v3952_v31, 0.0  ;;  %v3900_v29 = vmul.f32 %v4757_v57, %v6222_v4  ;;  %v3852_v36 = vpop.f32.mrb[25].mxu1 }
 0x57f   : > { %v4438_v38 = vpack.c.bf16 %v3965_v10, %v3965_v10  ;;  %v3966_v20 = vmax.f32 %v3950_v59, 0.0  ;;  %v3898_v17 = vmul.f32 %v6222_v4, %v3852_v36  ;;  %v4758_v24 = vpop.f32.mrb[26].mxu1 }
 0x580   : > { %4048 = vst.msk [vmem:[%s5169_s21 + $0x18] sm:$0xf] %vm4041_vm4, %v4440_v15  ;;  %v4441_v16 = vpack.c.bf16 %v3968_v56, %v3968_v56  ;;  %v3923_v14 = vadd.f32 %v6227_v49, %v3900_v29  ;;  %v3901_v23 = vmul.f32 %v4758_v24, %v6222_v4  ;;  %v3855_v48 = vpop.f32.mrb[27].mxu1 }
 0x581   : > { %4046 = vst.msk [vmem:[%s5169_s21 + $0x10] sm:$0xf] %vm4041_vm4, %v4438_v38  ;;  %v4439_v39 = vpack.c.bf16 %v3966_v20, %v3966_v20  ;;  %v3921_v11 = vadd.f32 %v6227_v49, %v3898_v17  ;;  %v3899_v30 = vmul.f32 %v6222_v4, %v3855_v48 }
 0x582   : > { %4049 = vst.msk [vmem:[%s5169_s21 + $0x1c] sm:$0xf] %vm4041_vm4, %v4441_v16  ;;  %v3955_v55 = vadd.f32 %v3939_v41, %v3923_v14  ;;  %v3924_v25 = vadd.f32 %v6227_v49, %v3901_v23 }
 0x583   : > { %4047 = vst.msk [vmem:[%s5169_s21 + $0x14] sm:$0xf] %vm4041_vm4, %v4439_v39  ;;  %v3953_v47 = vadd.f32 %v3937_v22, %v3921_v11  ;;  %v3922_v51 = vadd.f32 %v6227_v49, %v3899_v30 }
 0x584   : > { %v3971_v50 = vmax.f32 %v3955_v55, 0.0  ;;  %v3956_v6 = vadd.f32 %v3940_v33, %v3924_v25 }
 0x585   : > { %v3969_v19 = vmax.f32 %v3953_v47, 0.0  ;;  %v3954_v53 = vadd.f32 %v3938_v35, %v3922_v51  ;;  %v4761_v27 = vpop.f32.mrb[28].mxu1 }
 0x586   : > { %v4444_v42 = vpack.c.bf16 %v3971_v50, %v3971_v50  ;;  %v3972_v58 = vmax.f32 %v3956_v6, 0.0  ;;  %v3904_v13 = vmul.f32 %v4761_v27, %v6222_v4  ;;  %v3868_v37 = vpop.f32.mrb[29].mxu1 }
 0x587   : > { %v4442_v34 = vpack.c.bf16 %v3969_v19, %v3969_v19  ;;  %v3970_v63 = vmax.f32 %v3954_v53, 0.0  ;;  %v3902_v46 = vmul.f32 %v6222_v4, %v3868_v37  ;;  %v4762_v62 = vpop.f32.mrb[30].mxu1 }
 0x588   : > { %4052 = vst.msk [vmem:[%s5169_s21 + $0x28] sm:$0xf] %vm4041_vm4, %v4444_v42  ;;  %v4445_v54 = vpack.c.bf16 %v3972_v58, %v3972_v58  ;;  %v3927_v60 = vadd.f32 %v6227_v49, %v3904_v13  ;;  %v3905_v7 = vmul.f32 %v4762_v62, %v6222_v4  ;;  %v3871_v61 = vpop.f32.mrb[31].mxu1 }
 0x589   : > { %4050 = vst.msk [vmem:[%s5169_s21 + $0x20] sm:$0xf] %vm4041_vm4, %v4442_v34  ;;  %v4443_v2 = vpack.c.bf16 %v3970_v63, %v3970_v63  ;;  %v3925_v8 = vadd.f32 %v6227_v49, %v3902_v46  ;;  %v3903_v9 = vmul.f32 %v6222_v4, %v3871_v61 }
 0x58a   : > { %4053 = vst.msk [vmem:[%s5169_s21 + $0x2c] sm:$0xf] %vm4041_vm4, %v4445_v54  ;;  %v3959_v18 = vadd.f32 %v3943_v52, %v3927_v60  ;;  %v3928_v0 = vadd.f32 %v6227_v49, %v3905_v7 }
 0x58b   : > { %4051 = vst.msk [vmem:[%s5169_s21 + $0x24] sm:$0xf] %vm4041_vm4, %v4443_v2  ;;  %v3957_v43 = vadd.f32 %v3941_v3, %v3925_v8  ;;  %v3926_v21 = vadd.f32 %v6227_v49, %v3903_v9 }
 0x58c   : > { %v3975_v32 = vmax.f32 %v3959_v18, 0.0  ;;  %v3960_v28 = vadd.f32 %v3944_v45, %v3928_v0 }
 0x58d   : > { %v3973_v1 = vmax.f32 %v3957_v43, 0.0  ;;  %v3958_v4 = vadd.f32 %v3942_v5, %v3926_v21 }
 0x58e   : > { %v4448_v31 = vpack.c.bf16 %v3975_v32, %v3975_v32  ;;  %v3976_v10 = vmax.f32 %v3960_v28, 0.0 }
 0x58f   : > { %v4446_v59 = vpack.c.bf16 %v3973_v1, %v3973_v1  ;;  %v3974_v57 = vmax.f32 %v3958_v4, 0.0 }
 0x590   : > { %4056 = vst.msk [vmem:[%s5169_s21 + $0x38] sm:$0xf] %vm4041_vm4, %v4448_v31  ;;  %v4449_v15 = vpack.c.bf16 %v3976_v10, %v3976_v10 }
 0x591   : > { %4054 = vst.msk [vmem:[%s5169_s21 + $0x30] sm:$0xf] %vm4041_vm4, %v4446_v59  ;;  %v4447_v56 = vpack.c.bf16 %v3974_v57, %v3974_v57 }
 0x592   : > { %4057 = vst.msk [vmem:[%s5169_s21 + $0x3c] sm:$0xf] %vm4041_vm4, %v4449_v15 }
 0x593   : > { %4055 = vst.msk [vmem:[%s5169_s21 + $0x34] sm:$0xf] %vm4041_vm4, %v4447_v56 }
 0x594 PF: > { %s20_s17 = sadd.s32 1, %s5032_s17   ;;  %s6393_s13 = smov %s5024_s15 }
 0x595   : > { %p17_p11 = scmp.ge.s32.totalorder %s20_s17, 6   ;;  %s6394_s14 = smov %s5028_s16 }
 0x596   : > { %s6395_s15 = smov %s6398_s18  ;;  %s6396_s16 = smov %s6402_s19 }
 0x597   :  { %19 = sbr.rel (!%p17_p11) target bundleno = 3 (0x3), region = 121 }

</bundles_post_ra>
